<compile_context>
chip_gen: v5e
topology: v5e:2x2
jax: 0.10.0
libtpu: 0.0.40
codegen_flags: <defaults>
</compile_context>

<pallas_src>
import functools

import jax
import jax.numpy as jnp
from jax.experimental import pallas as pl
from jax.experimental.pallas import tpu as pltpu  # noqa: F401  (kept for scale-up TODOs)


# ----------------------------------------------------------------------------
# Fused Pallas kernel (all GRU layers + projection)
# ----------------------------------------------------------------------------
def _make_fused_kernel(T, B, H, n_layers, pred_len):
    """Build the fused kernel for static (T, B, H, n_layers, pred_len)."""

    def kernel(*refs):
        # refs = [x, (wih, whh, bgi, bhn) * n_layers, pw, pb, out]
        x_ref = refs[0]
        w_refs = refs[1:1 + 4 * n_layers]
        pw_ref = refs[1 + 4 * n_layers]
        pb_ref = refs[2 + 4 * n_layers]
        out_ref = refs[3 + 4 * n_layers]

        def gru_cell(h, gi_t, whh, bhn_b):
            # One hidden matmul + fused gate math per step (the only serial work).
            gh = jnp.dot(h, whh, preferred_element_type=jnp.float32)      # (B, 3H)
            rz = jax.nn.sigmoid(gi_t[:, :2 * H] + gh[:, :2 * H])          # 1 EUP push
            r = rz[:, :H]
            z = rz[:, H:]
            n = jnp.tanh(gi_t[:, 2 * H:] + r * (gh[:, 2 * H:] + bhn_b))
            return (1.0 - z) * n + z * h

        # ---------------- layer 0: cuDNN-style hoisted input projection ----------
        wih0 = w_refs[0][...]        # (In0, 3H)
        whh0 = w_refs[1][...]        # (H, 3H)
        bgi0 = w_refs[2][...]        # (1, 3H) = b_ih + [b_hh_r, b_hh_z, 0]
        bhn0 = w_refs[3][...]        # (1, H)  = b_hh (n gate)

        # One batched MXU matmul for ALL timesteps, fully off the serial chain.
        gi0 = jnp.dot(x_ref[...], wih0, preferred_element_type=jnp.float32) + bgi0
        # Static split once; these slices depend only on gi0, not on the recurrence.
        gi0_steps = [gi0[t * B:(t + 1) * B, :] for t in range(T)]

        bhn0_b = jnp.broadcast_to(bhn0, (B, H))   # hoisted: not re-materialized per step
        h = jnp.zeros((B, H), jnp.float32)
        outs = []
        # TODO(synk): at realistic seq_len (96-720) replace the unrolled Python loop
        # with lax.fori_loop(..., unroll=k) to bound vreg live ranges / imem.
        for t in range(T):
            h = gru_cell(h, gi0_steps[t], whh0, bhn0_b)
            outs.append(h)

        # ---------------- layers 1..L-1: per-step input proj (wavefront) ---------
        for layer in range(1, n_layers):
            wih = w_refs[4 * layer][...]          # (H, 3H)
            whh = w_refs[4 * layer + 1][...]      # (H, 3H)
            bgi = w_refs[4 * layer + 2][...]      # (1, 3H)
            bhn = w_refs[4 * layer + 3][...]      # (1, H)

            bgi_b = jnp.broadcast_to(bgi, (B, 3 * H))   # hoisted broadcasts
            bhn_b = jnp.broadcast_to(bhn, (B, H))

            h = jnp.zeros((B, H), jnp.float32)
            new_outs = []
            for t in range(T):
                # Depends only on prev layer's h_t (not its whole sequence), so this
                # layer's step t can overlap the previous layer's step t+1.
                gi_t = (
                    jnp.dot(outs[t], wih, preferred_element_type=jnp.float32) + bgi_b
                )
                h = gru_cell(h, gi_t, whh, bhn_b)
                new_outs.append(h)
            outs = new_outs

        # ---------------- fused projection epilogue ------------------------------
        # Only the last pred_len timesteps are projected / stored: one matmul, one store.
        tail = jnp.concatenate(outs[T - pred_len:], axis=0)               # (p*B, H)
        out_ref[...] = (
            jnp.dot(tail, pw_ref[...], preferred_element_type=jnp.float32)
            + pb_ref[...]
        )

    return kernel


# ----------------------------------------------------------------------------
# Wrapper
# ----------------------------------------------------------------------------
@functools.partial(jax.jit, static_argnames=("pred_len",))
def model_forward(x_enc, gru_params, proj_w, proj_b, pred_len):
    """Equivalent of Model.forward for task_name in {long,short}_term_forecast.

    x_enc: (B, T, enc_in) -> returns (B, min(pred_len, T), enc_in)
    """
    B, T, In0 = x_enc.shape
    H = gru_params[0][1].shape[1]
    C = proj_w.shape[0]
    n_layers = len(gru_params)
    p = min(pred_len, T)

    # Time-major flatten: row t*B + b  <->  (time t, batch b).
    x2d = jnp.transpose(x_enc, (1, 0, 2)).reshape(T * B, In0).astype(jnp.float32)

    args = [x2d]
    for (w_ih, w_hh, b_ih, b_hh) in gru_params:
        Hl = w_hh.shape[1]
        # Fold r/z hidden biases into the hoisted input-projection bias; keep the
        # n-gate hidden bias separate (it is multiplied by r inside the recurrence).
        bgi = b_ih + jnp.concatenate(
            [b_hh[:2 * Hl], jnp.zeros((Hl,), b_hh.dtype)]
        )
        args += [
            jnp.transpose(w_ih).astype(jnp.float32),            # (In_l, 3H)
            jnp.transpose(w_hh).astype(jnp.float32),            # (H, 3H)
            bgi.reshape(1, 3 * Hl).astype(jnp.float32),         # (1, 3H)
            b_hh[2 * Hl:].reshape(1, Hl).astype(jnp.float32),   # (1, H)
        ]
    args += [
        jnp.transpose(proj_w).astype(jnp.float32),              # (H, C)
        proj_b.reshape(1, C).astype(jnp.float32),                # (1, C)
    ]

    kernel = _make_fused_kernel(T=T, B=B, H=H, n_layers=n_layers, pred_len=p)

    # TODO(synk): at realistic batch sizes, add a leading batch-tile grid axis marked
    # "parallel" (CompilerParams(dimension_semantics=("parallel",...))) so v7x's second
    # TensorCore is used, set vmem_limit_bytes explicitly, chunk the layer-0 gi hoist
    # over time (pl.Buffered / emit_pipeline) to respect v7x's 64 MiB VMEM, and cast
    # weights/activations to bf16 for the matmuls. All moot at B=2, H=32, T=8.
    out2d = pl.pallas_call(
        kernel,
        out_shape=jax.ShapeDtypeStruct((p * B, C), jnp.float32),
    )(*args)

    y = out2d.reshape(p, B, C)
    return jnp.transpose(y, (1, 0, 2))                 # (B, p, C)


# ----------------------------------------------------------------------------
# Pure-JAX reference (for correctness check)
# ----------------------------------------------------------------------------
def _ref_forward(x_enc, gru_params, proj_w, proj_b, pred_len):
    h_all = x_enc  # (B, T, In)
    for (w_ih, w_hh, b_ih, b_hh) in gru_params:
        H = w_hh.shape[1]
        B = h_all.shape[0]

        def step(h, x_t):
            gi = x_t @ w_ih.T + b_ih
            gh = h @ w_hh.T + b_hh
            r = jax.nn.sigmoid(gi[:, :H] + gh[:, :H])
            z = jax.nn.sigmoid(gi[:, H:2 * H] + gh[:, H:2 * H])
            n = jnp.tanh(gi[:, 2 * H:] + r * gh[:, 2 * H:])
            h_new = (1.0 - z) * n + z * h
            return h_new, h_new

        h0 = jnp.zeros((B, H), jnp.float32)
        _, ys = jax.lax.scan(step, h0, jnp.transpose(h_all, (1, 0, 2)))
        h_all = jnp.transpose(ys, (1, 0, 2))
    out = h_all @ proj_w.T + proj_b
    return out[:, -pred_len:, :]


# ----------------------------------------------------------------------------
# Main
# ----------------------------------------------------------------------------
if __name__ == "__main__":
    # Config (small shapes consistent with the module)
    B, T = 2, 8
    enc_in = 4
    d_model = 32
    e_layers = 2
    pred_len = 8  # task_name = 'long_term_forecast'

    key = jax.random.PRNGKey(0)

    # Deterministic parameter init (PyTorch-style U(-1/sqrt(H), 1/sqrt(H)))
    k_gru = 1.0 / jnp.sqrt(jnp.float32(d_model))
    gru_params = []
    for layer in range(e_layers):
        in_size = enc_in if layer == 0 else d_model
        key, k1, k2, k3, k4 = jax.random.split(key, 5)
        w_ih = jax.random.uniform(k1, (3 * d_model, in_size), jnp.float32, -k_gru, k_gru)
        w_hh = jax.random.uniform(k2, (3 * d_model, d_model), jnp.float32, -k_gru, k_gru)
        b_ih = jax.random.uniform(k3, (3 * d_model,), jnp.float32, -k_gru, k_gru)
        b_hh = jax.random.uniform(k4, (3 * d_model,), jnp.float32, -k_gru, k_gru)
        gru_params.append((w_ih, w_hh, b_ih, b_hh))
    gru_params = tuple(gru_params)

    key, kp1, kp2 = jax.random.split(key, 3)
    k_lin = 1.0 / jnp.sqrt(jnp.float32(d_model))
    proj_w = jax.random.uniform(kp1, (enc_in, d_model), jnp.float32, -k_lin, k_lin)
    proj_b = jax.random.uniform(kp2, (enc_in,), jnp.float32, -k_lin, k_lin)

    # Inputs (x_mark_enc / x_dec / x_mark_dec are unused in the forecast path)
    key, kx = jax.random.split(key)
    x_enc = jax.random.normal(kx, (B, T, enc_in), jnp.float32)

    out = model_forward(x_enc, gru_params, proj_w, proj_b, pred_len)
    out = jax.block_until_ready(out)

    ref = _ref_forward(x_enc, gru_params, proj_w, proj_b, pred_len)
    assert out.shape == (B, pred_len, enc_in), out.shape
    assert jnp.allclose(out, ref, atol=1e-4, rtol=1e-4), "mismatch vs reference"

    print("KERNEL_OK")
</pallas_src>

<mosaic_0001>
module attributes {stable_mosaic.version = 11 : i64} {
  func.func @kernel(%arg0: memref<16x4xf32, #tpu.memory_space<vmem>>, %arg1: memref<4x96xf32, #tpu.memory_space<vmem>>, %arg2: memref<32x96xf32, #tpu.memory_space<vmem>>, %arg3: memref<1x96xf32, #tpu.memory_space<vmem>>, %arg4: memref<1x32xf32, #tpu.memory_space<vmem>>, %arg5: memref<32x96xf32, #tpu.memory_space<vmem>>, %arg6: memref<32x96xf32, #tpu.memory_space<vmem>>, %arg7: memref<1x96xf32, #tpu.memory_space<vmem>>, %arg8: memref<1x32xf32, #tpu.memory_space<vmem>>, %arg9: memref<32x4xf32, #tpu.memory_space<vmem>>, %arg10: memref<1x4xf32, #tpu.memory_space<vmem>>, %arg11: memref<16x4xf32, #tpu.memory_space<vmem>>) attributes {dimension_semantics = [], scalar_prefetch = 0 : i64, scratch_operands = 0 : i64, tpu.core_type = #tpu.core_type<tc>} {
    %c0 = arith.constant 0 : index
    %c0_0 = arith.constant 0 : index
    %0 = vector.load %arg1[%c0, %c0_0] : memref<4x96xf32, #tpu.memory_space<vmem>>, vector<4x96xf32>
    %c0_1 = arith.constant 0 : index
    %c0_2 = arith.constant 0 : index
    %1 = vector.load %arg2[%c0_1, %c0_2] : memref<32x96xf32, #tpu.memory_space<vmem>>, vector<32x96xf32>
    %c0_3 = arith.constant 0 : index
    %c0_4 = arith.constant 0 : index
    %2 = vector.load %arg3[%c0_3, %c0_4] : memref<1x96xf32, #tpu.memory_space<vmem>>, vector<1x96xf32>
    %c0_5 = arith.constant 0 : index
    %c0_6 = arith.constant 0 : index
    %3 = vector.load %arg4[%c0_5, %c0_6] : memref<1x32xf32, #tpu.memory_space<vmem>>, vector<1x32xf32>
    %c0_7 = arith.constant 0 : index
    %c0_8 = arith.constant 0 : index
    %4 = vector.load %arg0[%c0_7, %c0_8] : memref<16x4xf32, #tpu.memory_space<vmem>>, vector<16x4xf32>
    %cst = arith.constant dense<0.000000e+00> : vector<16x96xf32>
    %5 = tpu.matmul %4, %0, %cst {dimension_numbers = #tpu.dot_dimension_numbers<[1], [0], [0], [1], [0, 0, 1, 1], [], []>} : vector<16x4xf32>, vector<4x96xf32>, vector<16x96xf32> -> vector<16x96xf32>
    %6 = vector.broadcast %2 : vector<1x96xf32> to vector<16x96xf32>
    %7 = arith.addf %5, %6 : vector<16x96xf32>
    %8 = vector.extract_strided_slice %7 {offsets = [0, 0], sizes = [2, 96], strides = [1, 1]} : vector<16x96xf32> to vector<2x96xf32>
    %9 = vector.extract_strided_slice %7 {offsets = [2, 0], sizes = [2, 96], strides = [1, 1]} : vector<16x96xf32> to vector<2x96xf32>
    %10 = vector.extract_strided_slice %7 {offsets = [4, 0], sizes = [2, 96], strides = [1, 1]} : vector<16x96xf32> to vector<2x96xf32>
    %11 = vector.extract_strided_slice %7 {offsets = [6, 0], sizes = [2, 96], strides = [1, 1]} : vector<16x96xf32> to vector<2x96xf32>
    %12 = vector.extract_strided_slice %7 {offsets = [8, 0], sizes = [2, 96], strides = [1, 1]} : vector<16x96xf32> to vector<2x96xf32>
    %13 = vector.extract_strided_slice %7 {offsets = [10, 0], sizes = [2, 96], strides = [1, 1]} : vector<16x96xf32> to vector<2x96xf32>
    %14 = vector.extract_strided_slice %7 {offsets = [12, 0], sizes = [2, 96], strides = [1, 1]} : vector<16x96xf32> to vector<2x96xf32>
    %15 = vector.extract_strided_slice %7 {offsets = [14, 0], sizes = [2, 96], strides = [1, 1]} : vector<16x96xf32> to vector<2x96xf32>
    %16 = vector.shape_cast %3 : vector<1x32xf32> to vector<1x32xf32>
    %17 = vector.broadcast %16 : vector<1x32xf32> to vector<2x32xf32>
    %cst_9 = arith.constant 0.000000e+00 : f32
    %18 = vector.broadcast %cst_9 : f32 to vector<2x32xf32>
    %cst_10 = arith.constant dense<0.000000e+00> : vector<2x96xf32>
    %19 = tpu.matmul %18, %1, %cst_10 {dimension_numbers = #tpu.dot_dimension_numbers<[1], [0], [0], [1], [0, 0, 1, 1], [], []>} : vector<2x32xf32>, vector<32x96xf32>, vector<2x96xf32> -> vector<2x96xf32>
    %20 = vector.extract_strided_slice %8 {offsets = [0, 0], sizes = [2, 64], strides = [1, 1]} : vector<2x96xf32> to vector<2x64xf32>
    %21 = vector.extract_strided_slice %19 {offsets = [0, 0], sizes = [2, 64], strides = [1, 1]} : vector<2x96xf32> to vector<2x64xf32>
    %22 = arith.addf %20, %21 : vector<2x64xf32>
    %23 = arith.negf %22 : vector<2x64xf32>
    %24 = math.exp %23 : vector<2x64xf32>
    %cst_11 = arith.constant 1.000000e+00 : f32
    %25 = vector.broadcast %cst_11 : f32 to vector<2x64xf32>
    %26 = arith.addf %25, %24 : vector<2x64xf32>
    %27 = arith.divf %25, %26 : vector<2x64xf32>
    %28 = vector.extract_strided_slice %27 {offsets = [0, 0], sizes = [2, 32], strides = [1, 1]} : vector<2x64xf32> to vector<2x32xf32>
    %29 = vector.extract_strided_slice %27 {offsets = [0, 32], sizes = [2, 32], strides = [1, 1]} : vector<2x64xf32> to vector<2x32xf32>
    %30 = vector.extract_strided_slice %8 {offsets = [0, 64], sizes = [2, 32], strides = [1, 1]} : vector<2x96xf32> to vector<2x32xf32>
    %31 = vector.extract_strided_slice %19 {offsets = [0, 64], sizes = [2, 32], strides = [1, 1]} : vector<2x96xf32> to vector<2x32xf32>
    %32 = arith.addf %31, %17 : vector<2x32xf32>
    %33 = arith.mulf %28, %32 : vector<2x32xf32>
    %34 = arith.addf %30, %33 : vector<2x32xf32>
    %35 = math.tanh %34 : vector<2x32xf32>
    %cst_12 = arith.constant 1.000000e+00 : f32
    %36 = vector.broadcast %cst_12 : f32 to vector<2x32xf32>
    %37 = arith.subf %36, %29 : vector<2x32xf32>
    %38 = arith.mulf %37, %35 : vector<2x32xf32>
    %39 = arith.mulf %29, %18 : vector<2x32xf32>
    %40 = arith.addf %38, %39 : vector<2x32xf32>
    %cst_13 = arith.constant dense<0.000000e+00> : vector<2x96xf32>
    %41 = tpu.matmul %40, %1, %cst_13 {dimension_numbers = #tpu.dot_dimension_numbers<[1], [0], [0], [1], [0, 0, 1, 1], [], []>} : vector<2x32xf32>, vector<32x96xf32>, vector<2x96xf32> -> vector<2x96xf32>
    %42 = vector.extract_strided_slice %9 {offsets = [0, 0], sizes = [2, 64], strides = [1, 1]} : vector<2x96xf32> to vector<2x64xf32>
    %43 = vector.extract_strided_slice %41 {offsets = [0, 0], sizes = [2, 64], strides = [1, 1]} : vector<2x96xf32> to vector<2x64xf32>
    %44 = arith.addf %42, %43 : vector<2x64xf32>
    %45 = arith.negf %44 : vector<2x64xf32>
    %46 = math.exp %45 : vector<2x64xf32>
    %cst_14 = arith.constant 1.000000e+00 : f32
    %47 = vector.broadcast %cst_14 : f32 to vector<2x64xf32>
    %48 = arith.addf %47, %46 : vector<2x64xf32>
    %49 = arith.divf %47, %48 : vector<2x64xf32>
    %50 = vector.extract_strided_slice %49 {offsets = [0, 0], sizes = [2, 32], strides = [1, 1]} : vector<2x64xf32> to vector<2x32xf32>
    %51 = vector.extract_strided_slice %49 {offsets = [0, 32], sizes = [2, 32], strides = [1, 1]} : vector<2x64xf32> to vector<2x32xf32>
    %52 = vector.extract_strided_slice %9 {offsets = [0, 64], sizes = [2, 32], strides = [1, 1]} : vector<2x96xf32> to vector<2x32xf32>
    %53 = vector.extract_strided_slice %41 {offsets = [0, 64], sizes = [2, 32], strides = [1, 1]} : vector<2x96xf32> to vector<2x32xf32>
    %54 = arith.addf %53, %17 : vector<2x32xf32>
    %55 = arith.mulf %50, %54 : vector<2x32xf32>
    %56 = arith.addf %52, %55 : vector<2x32xf32>
    %57 = math.tanh %56 : vector<2x32xf32>
    %cst_15 = arith.constant 1.000000e+00 : f32
    %58 = vector.broadcast %cst_15 : f32 to vector<2x32xf32>
    %59 = arith.subf %58, %51 : vector<2x32xf32>
    %60 = arith.mulf %59, %57 : vector<2x32xf32>
    %61 = arith.mulf %51, %40 : vector<2x32xf32>
    %62 = arith.addf %60, %61 : vector<2x32xf32>
    %cst_16 = arith.constant dense<0.000000e+00> : vector<2x96xf32>
    %63 = tpu.matmul %62, %1, %cst_16 {dimension_numbers = #tpu.dot_dimension_numbers<[1], [0], [0], [1], [0, 0, 1, 1], [], []>} : vector<2x32xf32>, vector<32x96xf32>, vector<2x96xf32> -> vector<2x96xf32>
    %64 = vector.extract_strided_slice %10 {offsets = [0, 0], sizes = [2, 64], strides = [1, 1]} : vector<2x96xf32> to vector<2x64xf32>
    %65 = vector.extract_strided_slice %63 {offsets = [0, 0], sizes = [2, 64], strides = [1, 1]} : vector<2x96xf32> to vector<2x64xf32>
    %66 = arith.addf %64, %65 : vector<2x64xf32>
    %67 = arith.negf %66 : vector<2x64xf32>
    %68 = math.exp %67 : vector<2x64xf32>
    %cst_17 = arith.constant 1.000000e+00 : f32
    %69 = vector.broadcast %cst_17 : f32 to vector<2x64xf32>
    %70 = arith.addf %69, %68 : vector<2x64xf32>
    %71 = arith.divf %69, %70 : vector<2x64xf32>
    %72 = vector.extract_strided_slice %71 {offsets = [0, 0], sizes = [2, 32], strides = [1, 1]} : vector<2x64xf32> to vector<2x32xf32>
    %73 = vector.extract_strided_slice %71 {offsets = [0, 32], sizes = [2, 32], strides = [1, 1]} : vector<2x64xf32> to vector<2x32xf32>
    %74 = vector.extract_strided_slice %10 {offsets = [0, 64], sizes = [2, 32], strides = [1, 1]} : vector<2x96xf32> to vector<2x32xf32>
    %75 = vector.extract_strided_slice %63 {offsets = [0, 64], sizes = [2, 32], strides = [1, 1]} : vector<2x96xf32> to vector<2x32xf32>
    %76 = arith.addf %75, %17 : vector<2x32xf32>
    %77 = arith.mulf %72, %76 : vector<2x32xf32>
    %78 = arith.addf %74, %77 : vector<2x32xf32>
    %79 = math.tanh %78 : vector<2x32xf32>
    %cst_18 = arith.constant 1.000000e+00 : f32
    %80 = vector.broadcast %cst_18 : f32 to vector<2x32xf32>
    %81 = arith.subf %80, %73 : vector<2x32xf32>
    %82 = arith.mulf %81, %79 : vector<2x32xf32>
    %83 = arith.mulf %73, %62 : vector<2x32xf32>
    %84 = arith.addf %82, %83 : vector<2x32xf32>
    %cst_19 = arith.constant dense<0.000000e+00> : vector<2x96xf32>
    %85 = tpu.matmul %84, %1, %cst_19 {dimension_numbers = #tpu.dot_dimension_numbers<[1], [0], [0], [1], [0, 0, 1, 1], [], []>} : vector<2x32xf32>, vector<32x96xf32>, vector<2x96xf32> -> vector<2x96xf32>
    %86 = vector.extract_strided_slice %11 {offsets = [0, 0], sizes = [2, 64], strides = [1, 1]} : vector<2x96xf32> to vector<2x64xf32>
    %87 = vector.extract_strided_slice %85 {offsets = [0, 0], sizes = [2, 64], strides = [1, 1]} : vector<2x96xf32> to vector<2x64xf32>
    %88 = arith.addf %86, %87 : vector<2x64xf32>
    %89 = arith.negf %88 : vector<2x64xf32>
    %90 = math.exp %89 : vector<2x64xf32>
    %cst_20 = arith.constant 1.000000e+00 : f32
    %91 = vector.broadcast %cst_20 : f32 to vector<2x64xf32>
    %92 = arith.addf %91, %90 : vector<2x64xf32>
    %93 = arith.divf %91, %92 : vector<2x64xf32>
    %94 = vector.extract_strided_slice %93 {offsets = [0, 0], sizes = [2, 32], strides = [1, 1]} : vector<2x64xf32> to vector<2x32xf32>
    %95 = vector.extract_strided_slice %93 {offsets = [0, 32], sizes = [2, 32], strides = [1, 1]} : vector<2x64xf32> to vector<2x32xf32>
    %96 = vector.extract_strided_slice %11 {offsets = [0, 64], sizes = [2, 32], strides = [1, 1]} : vector<2x96xf32> to vector<2x32xf32>
    %97 = vector.extract_strided_slice %85 {offsets = [0, 64], sizes = [2, 32], strides = [1, 1]} : vector<2x96xf32> to vector<2x32xf32>
    %98 = arith.addf %97, %17 : vector<2x32xf32>
    %99 = arith.mulf %94, %98 : vector<2x32xf32>
    %100 = arith.addf %96, %99 : vector<2x32xf32>
    %101 = math.tanh %100 : vector<2x32xf32>
    %cst_21 = arith.constant 1.000000e+00 : f32
    %102 = vector.broadcast %cst_21 : f32 to vector<2x32xf32>
    %103 = arith.subf %102, %95 : vector<2x32xf32>
    %104 = arith.mulf %103, %101 : vector<2x32xf32>
    %105 = arith.mulf %95, %84 : vector<2x32xf32>
    %106 = arith.addf %104, %105 : vector<2x32xf32>
    %cst_22 = arith.constant dense<0.000000e+00> : vector<2x96xf32>
    %107 = tpu.matmul %106, %1, %cst_22 {dimension_numbers = #tpu.dot_dimension_numbers<[1], [0], [0], [1], [0, 0, 1, 1], [], []>} : vector<2x32xf32>, vector<32x96xf32>, vector<2x96xf32> -> vector<2x96xf32>
    %108 = vector.extract_strided_slice %12 {offsets = [0, 0], sizes = [2, 64], strides = [1, 1]} : vector<2x96xf32> to vector<2x64xf32>
    %109 = vector.extract_strided_slice %107 {offsets = [0, 0], sizes = [2, 64], strides = [1, 1]} : vector<2x96xf32> to vector<2x64xf32>
    %110 = arith.addf %108, %109 : vector<2x64xf32>
    %111 = arith.negf %110 : vector<2x64xf32>
    %112 = math.exp %111 : vector<2x64xf32>
    %cst_23 = arith.constant 1.000000e+00 : f32
    %113 = vector.broadcast %cst_23 : f32 to vector<2x64xf32>
    %114 = arith.addf %113, %112 : vector<2x64xf32>
    %115 = arith.divf %113, %114 : vector<2x64xf32>
    %116 = vector.extract_strided_slice %115 {offsets = [0, 0], sizes = [2, 32], strides = [1, 1]} : vector<2x64xf32> to vector<2x32xf32>
    %117 = vector.extract_strided_slice %115 {offsets = [0, 32], sizes = [2, 32], strides = [1, 1]} : vector<2x64xf32> to vector<2x32xf32>
    %118 = vector.extract_strided_slice %12 {offsets = [0, 64], sizes = [2, 32], strides = [1, 1]} : vector<2x96xf32> to vector<2x32xf32>
    %119 = vector.extract_strided_slice %107 {offsets = [0, 64], sizes = [2, 32], strides = [1, 1]} : vector<2x96xf32> to vector<2x32xf32>
    %120 = arith.addf %119, %17 : vector<2x32xf32>
    %121 = arith.mulf %116, %120 : vector<2x32xf32>
    %122 = arith.addf %118, %121 : vector<2x32xf32>
    %123 = math.tanh %122 : vector<2x32xf32>
    %cst_24 = arith.constant 1.000000e+00 : f32
    %124 = vector.broadcast %cst_24 : f32 to vector<2x32xf32>
    %125 = arith.subf %124, %117 : vector<2x32xf32>
    %126 = arith.mulf %125, %123 : vector<2x32xf32>
    %127 = arith.mulf %117, %106 : vector<2x32xf32>
    %128 = arith.addf %126, %127 : vector<2x32xf32>
    %cst_25 = arith.constant dense<0.000000e+00> : vector<2x96xf32>
    %129 = tpu.matmul %128, %1, %cst_25 {dimension_numbers = #tpu.dot_dimension_numbers<[1], [0], [0], [1], [0, 0, 1, 1], [], []>} : vector<2x32xf32>, vector<32x96xf32>, vector<2x96xf32> -> vector<2x96xf32>
    %130 = vector.extract_strided_slice %13 {offsets = [0, 0], sizes = [2, 64], strides = [1, 1]} : vector<2x96xf32> to vector<2x64xf32>
    %131 = vector.extract_strided_slice %129 {offsets = [0, 0], sizes = [2, 64], strides = [1, 1]} : vector<2x96xf32> to vector<2x64xf32>
    %132 = arith.addf %130, %131 : vector<2x64xf32>
    %133 = arith.negf %132 : vector<2x64xf32>
    %134 = math.exp %133 : vector<2x64xf32>
    %cst_26 = arith.constant 1.000000e+00 : f32
    %135 = vector.broadcast %cst_26 : f32 to vector<2x64xf32>
    %136 = arith.addf %135, %134 : vector<2x64xf32>
    %137 = arith.divf %135, %136 : vector<2x64xf32>
    %138 = vector.extract_strided_slice %137 {offsets = [0, 0], sizes = [2, 32], strides = [1, 1]} : vector<2x64xf32> to vector<2x32xf32>
    %139 = vector.extract_strided_slice %137 {offsets = [0, 32], sizes = [2, 32], strides = [1, 1]} : vector<2x64xf32> to vector<2x32xf32>
    %140 = vector.extract_strided_slice %13 {offsets = [0, 64], sizes = [2, 32], strides = [1, 1]} : vector<2x96xf32> to vector<2x32xf32>
    %141 = vector.extract_strided_slice %129 {offsets = [0, 64], sizes = [2, 32], strides = [1, 1]} : vector<2x96xf32> to vector<2x32xf32>
    %142 = arith.addf %141, %17 : vector<2x32xf32>
    %143 = arith.mulf %138, %142 : vector<2x32xf32>
    %144 = arith.addf %140, %143 : vector<2x32xf32>
    %145 = math.tanh %144 : vector<2x32xf32>
    %cst_27 = arith.constant 1.000000e+00 : f32
    %146 = vector.broadcast %cst_27 : f32 to vector<2x32xf32>
    %147 = arith.subf %146, %139 : vector<2x32xf32>
    %148 = arith.mulf %147, %145 : vector<2x32xf32>
    %149 = arith.mulf %139, %128 : vector<2x32xf32>
    %150 = arith.addf %148, %149 : vector<2x32xf32>
    %cst_28 = arith.constant dense<0.000000e+00> : vector<2x96xf32>
    %151 = tpu.matmul %150, %1, %cst_28 {dimension_numbers = #tpu.dot_dimension_numbers<[1], [0], [0], [1], [0, 0, 1, 1], [], []>} : vector<2x32xf32>, vector<32x96xf32>, vector<2x96xf32> -> vector<2x96xf32>
    %152 = vector.extract_strided_slice %14 {offsets = [0, 0], sizes = [2, 64], strides = [1, 1]} : vector<2x96xf32> to vector<2x64xf32>
    %153 = vector.extract_strided_slice %151 {offsets = [0, 0], sizes = [2, 64], strides = [1, 1]} : vector<2x96xf32> to vector<2x64xf32>
    %154 = arith.addf %152, %153 : vector<2x64xf32>
    %155 = arith.negf %154 : vector<2x64xf32>
    %156 = math.exp %155 : vector<2x64xf32>
    %cst_29 = arith.constant 1.000000e+00 : f32
    %157 = vector.broadcast %cst_29 : f32 to vector<2x64xf32>
    %158 = arith.addf %157, %156 : vector<2x64xf32>
    %159 = arith.divf %157, %158 : vector<2x64xf32>
    %160 = vector.extract_strided_slice %159 {offsets = [0, 0], sizes = [2, 32], strides = [1, 1]} : vector<2x64xf32> to vector<2x32xf32>
    %161 = vector.extract_strided_slice %159 {offsets = [0, 32], sizes = [2, 32], strides = [1, 1]} : vector<2x64xf32> to vector<2x32xf32>
    %162 = vector.extract_strided_slice %14 {offsets = [0, 64], sizes = [2, 32], strides = [1, 1]} : vector<2x96xf32> to vector<2x32xf32>
    %163 = vector.extract_strided_slice %151 {offsets = [0, 64], sizes = [2, 32], strides = [1, 1]} : vector<2x96xf32> to vector<2x32xf32>
    %164 = arith.addf %163, %17 : vector<2x32xf32>
    %165 = arith.mulf %160, %164 : vector<2x32xf32>
    %166 = arith.addf %162, %165 : vector<2x32xf32>
    %167 = math.tanh %166 : vector<2x32xf32>
    %cst_30 = arith.constant 1.000000e+00 : f32
    %168 = vector.broadcast %cst_30 : f32 to vector<2x32xf32>
    %169 = arith.subf %168, %161 : vector<2x32xf32>
    %170 = arith.mulf %169, %167 : vector<2x32xf32>
    %171 = arith.mulf %161, %150 : vector<2x32xf32>
    %172 = arith.addf %170, %171 : vector<2x32xf32>
    %cst_31 = arith.constant dense<0.000000e+00> : vector<2x96xf32>
    %173 = tpu.matmul %172, %1, %cst_31 {dimension_numbers = #tpu.dot_dimension_numbers<[1], [0], [0], [1], [0, 0, 1, 1], [], []>} : vector<2x32xf32>, vector<32x96xf32>, vector<2x96xf32> -> vector<2x96xf32>
    %174 = vector.extract_strided_slice %15 {offsets = [0, 0], sizes = [2, 64], strides = [1, 1]} : vector<2x96xf32> to vector<2x64xf32>
    %175 = vector.extract_strided_slice %173 {offsets = [0, 0], sizes = [2, 64], strides = [1, 1]} : vector<2x96xf32> to vector<2x64xf32>
    %176 = arith.addf %174, %175 : vector<2x64xf32>
    %177 = arith.negf %176 : vector<2x64xf32>
    %178 = math.exp %177 : vector<2x64xf32>
    %cst_32 = arith.constant 1.000000e+00 : f32
    %179 = vector.broadcast %cst_32 : f32 to vector<2x64xf32>
    %180 = arith.addf %179, %178 : vector<2x64xf32>
    %181 = arith.divf %179, %180 : vector<2x64xf32>
    %182 = vector.extract_strided_slice %181 {offsets = [0, 0], sizes = [2, 32], strides = [1, 1]} : vector<2x64xf32> to vector<2x32xf32>
    %183 = vector.extract_strided_slice %181 {offsets = [0, 32], sizes = [2, 32], strides = [1, 1]} : vector<2x64xf32> to vector<2x32xf32>
    %184 = vector.extract_strided_slice %15 {offsets = [0, 64], sizes = [2, 32], strides = [1, 1]} : vector<2x96xf32> to vector<2x32xf32>
    %185 = vector.extract_strided_slice %173 {offsets = [0, 64], sizes = [2, 32], strides = [1, 1]} : vector<2x96xf32> to vector<2x32xf32>
    %186 = arith.addf %185, %17 : vector<2x32xf32>
    %187 = arith.mulf %182, %186 : vector<2x32xf32>
    %188 = arith.addf %184, %187 : vector<2x32xf32>
    %189 = math.tanh %188 : vector<2x32xf32>
    %cst_33 = arith.constant 1.000000e+00 : f32
    %190 = vector.broadcast %cst_33 : f32 to vector<2x32xf32>
    %191 = arith.subf %190, %183 : vector<2x32xf32>
    %192 = arith.mulf %191, %189 : vector<2x32xf32>
    %193 = arith.mulf %183, %172 : vector<2x32xf32>
    %194 = arith.addf %192, %193 : vector<2x32xf32>
    %c0_34 = arith.constant 0 : index
    %c0_35 = arith.constant 0 : index
    %195 = vector.load %arg5[%c0_34, %c0_35] : memref<32x96xf32, #tpu.memory_space<vmem>>, vector<32x96xf32>
    %c0_36 = arith.constant 0 : index
    %c0_37 = arith.constant 0 : index
    %196 = vector.load %arg6[%c0_36, %c0_37] : memref<32x96xf32, #tpu.memory_space<vmem>>, vector<32x96xf32>
    %c0_38 = arith.constant 0 : index
    %c0_39 = arith.constant 0 : index
    %197 = vector.load %arg7[%c0_38, %c0_39] : memref<1x96xf32, #tpu.memory_space<vmem>>, vector<1x96xf32>
    %c0_40 = arith.constant 0 : index
    %c0_41 = arith.constant 0 : index
    %198 = vector.load %arg8[%c0_40, %c0_41] : memref<1x32xf32, #tpu.memory_space<vmem>>, vector<1x32xf32>
    %199 = vector.shape_cast %197 : vector<1x96xf32> to vector<1x96xf32>
    %200 = vector.broadcast %199 : vector<1x96xf32> to vector<2x96xf32>
    %201 = vector.shape_cast %198 : vector<1x32xf32> to vector<1x32xf32>
    %202 = vector.broadcast %201 : vector<1x32xf32> to vector<2x32xf32>
    %cst_42 = arith.constant 0.000000e+00 : f32
    %203 = vector.broadcast %cst_42 : f32 to vector<2x32xf32>
    %cst_43 = arith.constant dense<0.000000e+00> : vector<2x96xf32>
    %204 = tpu.matmul %40, %195, %cst_43 {dimension_numbers = #tpu.dot_dimension_numbers<[1], [0], [0], [1], [0, 0, 1, 1], [], []>} : vector<2x32xf32>, vector<32x96xf32>, vector<2x96xf32> -> vector<2x96xf32>
    %205 = arith.addf %204, %200 : vector<2x96xf32>
    %cst_44 = arith.constant dense<0.000000e+00> : vector<2x96xf32>
    %206 = tpu.matmul %203, %196, %cst_44 {dimension_numbers = #tpu.dot_dimension_numbers<[1], [0], [0], [1], [0, 0, 1, 1], [], []>} : vector<2x32xf32>, vector<32x96xf32>, vector<2x96xf32> -> vector<2x96xf32>
    %207 = vector.extract_strided_slice %205 {offsets = [0, 0], sizes = [2, 64], strides = [1, 1]} : vector<2x96xf32> to vector<2x64xf32>
    %208 = vector.extract_strided_slice %206 {offsets = [0, 0], sizes = [2, 64], strides = [1, 1]} : vector<2x96xf32> to vector<2x64xf32>
    %209 = arith.addf %207, %208 : vector<2x64xf32>
    %210 = arith.negf %209 : vector<2x64xf32>
    %211 = math.exp %210 : vector<2x64xf32>
    %cst_45 = arith.constant 1.000000e+00 : f32
    %212 = vector.broadcast %cst_45 : f32 to vector<2x64xf32>
    %213 = arith.addf %212, %211 : vector<2x64xf32>
    %214 = arith.divf %212, %213 : vector<2x64xf32>
    %215 = vector.extract_strided_slice %214 {offsets = [0, 0], sizes = [2, 32], strides = [1, 1]} : vector<2x64xf32> to vector<2x32xf32>
    %216 = vector.extract_strided_slice %214 {offsets = [0, 32], sizes = [2, 32], strides = [1, 1]} : vector<2x64xf32> to vector<2x32xf32>
    %217 = vector.extract_strided_slice %205 {offsets = [0, 64], sizes = [2, 32], strides = [1, 1]} : vector<2x96xf32> to vector<2x32xf32>
    %218 = vector.extract_strided_slice %206 {offsets = [0, 64], sizes = [2, 32], strides = [1, 1]} : vector<2x96xf32> to vector<2x32xf32>
    %219 = arith.addf %218, %202 : vector<2x32xf32>
    %220 = arith.mulf %215, %219 : vector<2x32xf32>
    %221 = arith.addf %217, %220 : vector<2x32xf32>
    %222 = math.tanh %221 : vector<2x32xf32>
    %cst_46 = arith.constant 1.000000e+00 : f32
    %223 = vector.broadcast %cst_46 : f32 to vector<2x32xf32>
    %224 = arith.subf %223, %216 : vector<2x32xf32>
    %225 = arith.mulf %224, %222 : vector<2x32xf32>
    %226 = arith.mulf %216, %203 : vector<2x32xf32>
    %227 = arith.addf %225, %226 : vector<2x32xf32>
    %cst_47 = arith.constant dense<0.000000e+00> : vector<2x96xf32>
    %228 = tpu.matmul %62, %195, %cst_47 {dimension_numbers = #tpu.dot_dimension_numbers<[1], [0], [0], [1], [0, 0, 1, 1], [], []>} : vector<2x32xf32>, vector<32x96xf32>, vector<2x96xf32> -> vector<2x96xf32>
    %229 = arith.addf %228, %200 : vector<2x96xf32>
    %cst_48 = arith.constant dense<0.000000e+00> : vector<2x96xf32>
    %230 = tpu.matmul %227, %196, %cst_48 {dimension_numbers = #tpu.dot_dimension_numbers<[1], [0], [0], [1], [0, 0, 1, 1], [], []>} : vector<2x32xf32>, vector<32x96xf32>, vector<2x96xf32> -> vector<2x96xf32>
    %231 = vector.extract_strided_slice %229 {offsets = [0, 0], sizes = [2, 64], strides = [1, 1]} : vector<2x96xf32> to vector<2x64xf32>
    %232 = vector.extract_strided_slice %230 {offsets = [0, 0], sizes = [2, 64], strides = [1, 1]} : vector<2x96xf32> to vector<2x64xf32>
    %233 = arith.addf %231, %232 : vector<2x64xf32>
    %234 = arith.negf %233 : vector<2x64xf32>
    %235 = math.exp %234 : vector<2x64xf32>
    %cst_49 = arith.constant 1.000000e+00 : f32
    %236 = vector.broadcast %cst_49 : f32 to vector<2x64xf32>
    %237 = arith.addf %236, %235 : vector<2x64xf32>
    %238 = arith.divf %236, %237 : vector<2x64xf32>
    %239 = vector.extract_strided_slice %238 {offsets = [0, 0], sizes = [2, 32], strides = [1, 1]} : vector<2x64xf32> to vector<2x32xf32>
    %240 = vector.extract_strided_slice %238 {offsets = [0, 32], sizes = [2, 32], strides = [1, 1]} : vector<2x64xf32> to vector<2x32xf32>
    %241 = vector.extract_strided_slice %229 {offsets = [0, 64], sizes = [2, 32], strides = [1, 1]} : vector<2x96xf32> to vector<2x32xf32>
    %242 = vector.extract_strided_slice %230 {offsets = [0, 64], sizes = [2, 32], strides = [1, 1]} : vector<2x96xf32> to vector<2x32xf32>
    %243 = arith.addf %242, %202 : vector<2x32xf32>
    %244 = arith.mulf %239, %243 : vector<2x32xf32>
    %245 = arith.addf %241, %244 : vector<2x32xf32>
    %246 = math.tanh %245 : vector<2x32xf32>
    %cst_50 = arith.constant 1.000000e+00 : f32
    %247 = vector.broadcast %cst_50 : f32 to vector<2x32xf32>
    %248 = arith.subf %247, %240 : vector<2x32xf32>
    %249 = arith.mulf %248, %246 : vector<2x32xf32>
    %250 = arith.mulf %240, %227 : vector<2x32xf32>
    %251 = arith.addf %249, %250 : vector<2x32xf32>
    %cst_51 = arith.constant dense<0.000000e+00> : vector<2x96xf32>
    %252 = tpu.matmul %84, %195, %cst_51 {dimension_numbers = #tpu.dot_dimension_numbers<[1], [0], [0], [1], [0, 0, 1, 1], [], []>} : vector<2x32xf32>, vector<32x96xf32>, vector<2x96xf32> -> vector<2x96xf32>
    %253 = arith.addf %252, %200 : vector<2x96xf32>
    %cst_52 = arith.constant dense<0.000000e+00> : vector<2x96xf32>
    %254 = tpu.matmul %251, %196, %cst_52 {dimension_numbers = #tpu.dot_dimension_numbers<[1], [0], [0], [1], [0, 0, 1, 1], [], []>} : vector<2x32xf32>, vector<32x96xf32>, vector<2x96xf32> -> vector<2x96xf32>
    %255 = vector.extract_strided_slice %253 {offsets = [0, 0], sizes = [2, 64], strides = [1, 1]} : vector<2x96xf32> to vector<2x64xf32>
    %256 = vector.extract_strided_slice %254 {offsets = [0, 0], sizes = [2, 64], strides = [1, 1]} : vector<2x96xf32> to vector<2x64xf32>
    %257 = arith.addf %255, %256 : vector<2x64xf32>
    %258 = arith.negf %257 : vector<2x64xf32>
    %259 = math.exp %258 : vector<2x64xf32>
    %cst_53 = arith.constant 1.000000e+00 : f32
    %260 = vector.broadcast %cst_53 : f32 to vector<2x64xf32>
    %261 = arith.addf %260, %259 : vector<2x64xf32>
    %262 = arith.divf %260, %261 : vector<2x64xf32>
    %263 = vector.extract_strided_slice %262 {offsets = [0, 0], sizes = [2, 32], strides = [1, 1]} : vector<2x64xf32> to vector<2x32xf32>
    %264 = vector.extract_strided_slice %262 {offsets = [0, 32], sizes = [2, 32], strides = [1, 1]} : vector<2x64xf32> to vector<2x32xf32>
    %265 = vector.extract_strided_slice %253 {offsets = [0, 64], sizes = [2, 32], strides = [1, 1]} : vector<2x96xf32> to vector<2x32xf32>
    %266 = vector.extract_strided_slice %254 {offsets = [0, 64], sizes = [2, 32], strides = [1, 1]} : vector<2x96xf32> to vector<2x32xf32>
    %267 = arith.addf %266, %202 : vector<2x32xf32>
    %268 = arith.mulf %263, %267 : vector<2x32xf32>
    %269 = arith.addf %265, %268 : vector<2x32xf32>
    %270 = math.tanh %269 : vector<2x32xf32>
    %cst_54 = arith.constant 1.000000e+00 : f32
    %271 = vector.broadcast %cst_54 : f32 to vector<2x32xf32>
    %272 = arith.subf %271, %264 : vector<2x32xf32>
    %273 = arith.mulf %272, %270 : vector<2x32xf32>
    %274 = arith.mulf %264, %251 : vector<2x32xf32>
    %275 = arith.addf %273, %274 : vector<2x32xf32>
    %cst_55 = arith.constant dense<0.000000e+00> : vector<2x96xf32>
    %276 = tpu.matmul %106, %195, %cst_55 {dimension_numbers = #tpu.dot_dimension_numbers<[1], [0], [0], [1], [0, 0, 1, 1], [], []>} : vector<2x32xf32>, vector<32x96xf32>, vector<2x96xf32> -> vector<2x96xf32>
    %277 = arith.addf %276, %200 : vector<2x96xf32>
    %cst_56 = arith.constant dense<0.000000e+00> : vector<2x96xf32>
    %278 = tpu.matmul %275, %196, %cst_56 {dimension_numbers = #tpu.dot_dimension_numbers<[1], [0], [0], [1], [0, 0, 1, 1], [], []>} : vector<2x32xf32>, vector<32x96xf32>, vector<2x96xf32> -> vector<2x96xf32>
    %279 = vector.extract_strided_slice %277 {offsets = [0, 0], sizes = [2, 64], strides = [1, 1]} : vector<2x96xf32> to vector<2x64xf32>
    %280 = vector.extract_strided_slice %278 {offsets = [0, 0], sizes = [2, 64], strides = [1, 1]} : vector<2x96xf32> to vector<2x64xf32>
    %281 = arith.addf %279, %280 : vector<2x64xf32>
    %282 = arith.negf %281 : vector<2x64xf32>
    %283 = math.exp %282 : vector<2x64xf32>
    %cst_57 = arith.constant 1.000000e+00 : f32
    %284 = vector.broadcast %cst_57 : f32 to vector<2x64xf32>
    %285 = arith.addf %284, %283 : vector<2x64xf32>
    %286 = arith.divf %284, %285 : vector<2x64xf32>
    %287 = vector.extract_strided_slice %286 {offsets = [0, 0], sizes = [2, 32], strides = [1, 1]} : vector<2x64xf32> to vector<2x32xf32>
    %288 = vector.extract_strided_slice %286 {offsets = [0, 32], sizes = [2, 32], strides = [1, 1]} : vector<2x64xf32> to vector<2x32xf32>
    %289 = vector.extract_strided_slice %277 {offsets = [0, 64], sizes = [2, 32], strides = [1, 1]} : vector<2x96xf32> to vector<2x32xf32>
    %290 = vector.extract_strided_slice %278 {offsets = [0, 64], sizes = [2, 32], strides = [1, 1]} : vector<2x96xf32> to vector<2x32xf32>
    %291 = arith.addf %290, %202 : vector<2x32xf32>
    %292 = arith.mulf %287, %291 : vector<2x32xf32>
    %293 = arith.addf %289, %292 : vector<2x32xf32>
    %294 = math.tanh %293 : vector<2x32xf32>
    %cst_58 = arith.constant 1.000000e+00 : f32
    %295 = vector.broadcast %cst_58 : f32 to vector<2x32xf32>
    %296 = arith.subf %295, %288 : vector<2x32xf32>
    %297 = arith.mulf %296, %294 : vector<2x32xf32>
    %298 = arith.mulf %288, %275 : vector<2x32xf32>
    %299 = arith.addf %297, %298 : vector<2x32xf32>
    %cst_59 = arith.constant dense<0.000000e+00> : vector<2x96xf32>
    %300 = tpu.matmul %128, %195, %cst_59 {dimension_numbers = #tpu.dot_dimension_numbers<[1], [0], [0], [1], [0, 0, 1, 1], [], []>} : vector<2x32xf32>, vector<32x96xf32>, vector<2x96xf32> -> vector<2x96xf32>
    %301 = arith.addf %300, %200 : vector<2x96xf32>
    %cst_60 = arith.constant dense<0.000000e+00> : vector<2x96xf32>
    %302 = tpu.matmul %299, %196, %cst_60 {dimension_numbers = #tpu.dot_dimension_numbers<[1], [0], [0], [1], [0, 0, 1, 1], [], []>} : vector<2x32xf32>, vector<32x96xf32>, vector<2x96xf32> -> vector<2x96xf32>
    %303 = vector.extract_strided_slice %301 {offsets = [0, 0], sizes = [2, 64], strides = [1, 1]} : vector<2x96xf32> to vector<2x64xf32>
    %304 = vector.extract_strided_slice %302 {offsets = [0, 0], sizes = [2, 64], strides = [1, 1]} : vector<2x96xf32> to vector<2x64xf32>
    %305 = arith.addf %303, %304 : vector<2x64xf32>
    %306 = arith.negf %305 : vector<2x64xf32>
    %307 = math.exp %306 : vector<2x64xf32>
    %cst_61 = arith.constant 1.000000e+00 : f32
    %308 = vector.broadcast %cst_61 : f32 to vector<2x64xf32>
    %309 = arith.addf %308, %307 : vector<2x64xf32>
    %310 = arith.divf %308, %309 : vector<2x64xf32>
    %311 = vector.extract_strided_slice %310 {offsets = [0, 0], sizes = [2, 32], strides = [1, 1]} : vector<2x64xf32> to vector<2x32xf32>
    %312 = vector.extract_strided_slice %310 {offsets = [0, 32], sizes = [2, 32], strides = [1, 1]} : vector<2x64xf32> to vector<2x32xf32>
    %313 = vector.extract_strided_slice %301 {offsets = [0, 64], sizes = [2, 32], strides = [1, 1]} : vector<2x96xf32> to vector<2x32xf32>
    %314 = vector.extract_strided_slice %302 {offsets = [0, 64], sizes = [2, 32], strides = [1, 1]} : vector<2x96xf32> to vector<2x32xf32>
    %315 = arith.addf %314, %202 : vector<2x32xf32>
    %316 = arith.mulf %311, %315 : vector<2x32xf32>
    %317 = arith.addf %313, %316 : vector<2x32xf32>
    %318 = math.tanh %317 : vector<2x32xf32>
    %cst_62 = arith.constant 1.000000e+00 : f32
    %319 = vector.broadcast %cst_62 : f32 to vector<2x32xf32>
    %320 = arith.subf %319, %312 : vector<2x32xf32>
    %321 = arith.mulf %320, %318 : vector<2x32xf32>
    %322 = arith.mulf %312, %299 : vector<2x32xf32>
    %323 = arith.addf %321, %322 : vector<2x32xf32>
    %cst_63 = arith.constant dense<0.000000e+00> : vector<2x96xf32>
    %324 = tpu.matmul %150, %195, %cst_63 {dimension_numbers = #tpu.dot_dimension_numbers<[1], [0], [0], [1], [0, 0, 1, 1], [], []>} : vector<2x32xf32>, vector<32x96xf32>, vector<2x96xf32> -> vector<2x96xf32>
    %325 = arith.addf %324, %200 : vector<2x96xf32>
    %cst_64 = arith.constant dense<0.000000e+00> : vector<2x96xf32>
    %326 = tpu.matmul %323, %196, %cst_64 {dimension_numbers = #tpu.dot_dimension_numbers<[1], [0], [0], [1], [0, 0, 1, 1], [], []>} : vector<2x32xf32>, vector<32x96xf32>, vector<2x96xf32> -> vector<2x96xf32>
    %327 = vector.extract_strided_slice %325 {offsets = [0, 0], sizes = [2, 64], strides = [1, 1]} : vector<2x96xf32> to vector<2x64xf32>
    %328 = vector.extract_strided_slice %326 {offsets = [0, 0], sizes = [2, 64], strides = [1, 1]} : vector<2x96xf32> to vector<2x64xf32>
    %329 = arith.addf %327, %328 : vector<2x64xf32>
    %330 = arith.negf %329 : vector<2x64xf32>
    %331 = math.exp %330 : vector<2x64xf32>
    %cst_65 = arith.constant 1.000000e+00 : f32
    %332 = vector.broadcast %cst_65 : f32 to vector<2x64xf32>
    %333 = arith.addf %332, %331 : vector<2x64xf32>
    %334 = arith.divf %332, %333 : vector<2x64xf32>
    %335 = vector.extract_strided_slice %334 {offsets = [0, 0], sizes = [2, 32], strides = [1, 1]} : vector<2x64xf32> to vector<2x32xf32>
    %336 = vector.extract_strided_slice %334 {offsets = [0, 32], sizes = [2, 32], strides = [1, 1]} : vector<2x64xf32> to vector<2x32xf32>
    %337 = vector.extract_strided_slice %325 {offsets = [0, 64], sizes = [2, 32], strides = [1, 1]} : vector<2x96xf32> to vector<2x32xf32>
    %338 = vector.extract_strided_slice %326 {offsets = [0, 64], sizes = [2, 32], strides = [1, 1]} : vector<2x96xf32> to vector<2x32xf32>
    %339 = arith.addf %338, %202 : vector<2x32xf32>
    %340 = arith.mulf %335, %339 : vector<2x32xf32>
    %341 = arith.addf %337, %340 : vector<2x32xf32>
    %342 = math.tanh %341 : vector<2x32xf32>
    %cst_66 = arith.constant 1.000000e+00 : f32
    %343 = vector.broadcast %cst_66 : f32 to vector<2x32xf32>
    %344 = arith.subf %343, %336 : vector<2x32xf32>
    %345 = arith.mulf %344, %342 : vector<2x32xf32>
    %346 = arith.mulf %336, %323 : vector<2x32xf32>
    %347 = arith.addf %345, %346 : vector<2x32xf32>
    %cst_67 = arith.constant dense<0.000000e+00> : vector<2x96xf32>
    %348 = tpu.matmul %172, %195, %cst_67 {dimension_numbers = #tpu.dot_dimension_numbers<[1], [0], [0], [1], [0, 0, 1, 1], [], []>} : vector<2x32xf32>, vector<32x96xf32>, vector<2x96xf32> -> vector<2x96xf32>
    %349 = arith.addf %348, %200 : vector<2x96xf32>
    %cst_68 = arith.constant dense<0.000000e+00> : vector<2x96xf32>
    %350 = tpu.matmul %347, %196, %cst_68 {dimension_numbers = #tpu.dot_dimension_numbers<[1], [0], [0], [1], [0, 0, 1, 1], [], []>} : vector<2x32xf32>, vector<32x96xf32>, vector<2x96xf32> -> vector<2x96xf32>
    %351 = vector.extract_strided_slice %349 {offsets = [0, 0], sizes = [2, 64], strides = [1, 1]} : vector<2x96xf32> to vector<2x64xf32>
    %352 = vector.extract_strided_slice %350 {offsets = [0, 0], sizes = [2, 64], strides = [1, 1]} : vector<2x96xf32> to vector<2x64xf32>
    %353 = arith.addf %351, %352 : vector<2x64xf32>
    %354 = arith.negf %353 : vector<2x64xf32>
    %355 = math.exp %354 : vector<2x64xf32>
    %cst_69 = arith.constant 1.000000e+00 : f32
    %356 = vector.broadcast %cst_69 : f32 to vector<2x64xf32>
    %357 = arith.addf %356, %355 : vector<2x64xf32>
    %358 = arith.divf %356, %357 : vector<2x64xf32>
    %359 = vector.extract_strided_slice %358 {offsets = [0, 0], sizes = [2, 32], strides = [1, 1]} : vector<2x64xf32> to vector<2x32xf32>
    %360 = vector.extract_strided_slice %358 {offsets = [0, 32], sizes = [2, 32], strides = [1, 1]} : vector<2x64xf32> to vector<2x32xf32>
    %361 = vector.extract_strided_slice %349 {offsets = [0, 64], sizes = [2, 32], strides = [1, 1]} : vector<2x96xf32> to vector<2x32xf32>
    %362 = vector.extract_strided_slice %350 {offsets = [0, 64], sizes = [2, 32], strides = [1, 1]} : vector<2x96xf32> to vector<2x32xf32>
    %363 = arith.addf %362, %202 : vector<2x32xf32>
    %364 = arith.mulf %359, %363 : vector<2x32xf32>
    %365 = arith.addf %361, %364 : vector<2x32xf32>
    %366 = math.tanh %365 : vector<2x32xf32>
    %cst_70 = arith.constant 1.000000e+00 : f32
    %367 = vector.broadcast %cst_70 : f32 to vector<2x32xf32>
    %368 = arith.subf %367, %360 : vector<2x32xf32>
    %369 = arith.mulf %368, %366 : vector<2x32xf32>
    %370 = arith.mulf %360, %347 : vector<2x32xf32>
    %371 = arith.addf %369, %370 : vector<2x32xf32>
    %cst_71 = arith.constant dense<0.000000e+00> : vector<2x96xf32>
    %372 = tpu.matmul %194, %195, %cst_71 {dimension_numbers = #tpu.dot_dimension_numbers<[1], [0], [0], [1], [0, 0, 1, 1], [], []>} : vector<2x32xf32>, vector<32x96xf32>, vector<2x96xf32> -> vector<2x96xf32>
    %373 = arith.addf %372, %200 : vector<2x96xf32>
    %cst_72 = arith.constant dense<0.000000e+00> : vector<2x96xf32>
    %374 = tpu.matmul %371, %196, %cst_72 {dimension_numbers = #tpu.dot_dimension_numbers<[1], [0], [0], [1], [0, 0, 1, 1], [], []>} : vector<2x32xf32>, vector<32x96xf32>, vector<2x96xf32> -> vector<2x96xf32>
    %375 = vector.extract_strided_slice %373 {offsets = [0, 0], sizes = [2, 64], strides = [1, 1]} : vector<2x96xf32> to vector<2x64xf32>
    %376 = vector.extract_strided_slice %374 {offsets = [0, 0], sizes = [2, 64], strides = [1, 1]} : vector<2x96xf32> to vector<2x64xf32>
    %377 = arith.addf %375, %376 : vector<2x64xf32>
    %378 = arith.negf %377 : vector<2x64xf32>
    %379 = math.exp %378 : vector<2x64xf32>
    %cst_73 = arith.constant 1.000000e+00 : f32
    %380 = vector.broadcast %cst_73 : f32 to vector<2x64xf32>
    %381 = arith.addf %380, %379 : vector<2x64xf32>
    %382 = arith.divf %380, %381 : vector<2x64xf32>
    %383 = vector.extract_strided_slice %382 {offsets = [0, 0], sizes = [2, 32], strides = [1, 1]} : vector<2x64xf32> to vector<2x32xf32>
    %384 = vector.extract_strided_slice %382 {offsets = [0, 32], sizes = [2, 32], strides = [1, 1]} : vector<2x64xf32> to vector<2x32xf32>
    %385 = vector.extract_strided_slice %373 {offsets = [0, 64], sizes = [2, 32], strides = [1, 1]} : vector<2x96xf32> to vector<2x32xf32>
    %386 = vector.extract_strided_slice %374 {offsets = [0, 64], sizes = [2, 32], strides = [1, 1]} : vector<2x96xf32> to vector<2x32xf32>
    %387 = arith.addf %386, %202 : vector<2x32xf32>
    %388 = arith.mulf %383, %387 : vector<2x32xf32>
    %389 = arith.addf %385, %388 : vector<2x32xf32>
    %390 = math.tanh %389 : vector<2x32xf32>
    %cst_74 = arith.constant 1.000000e+00 : f32
    %391 = vector.broadcast %cst_74 : f32 to vector<2x32xf32>
    %392 = arith.subf %391, %384 : vector<2x32xf32>
    %393 = arith.mulf %392, %390 : vector<2x32xf32>
    %394 = arith.mulf %384, %371 : vector<2x32xf32>
    %395 = arith.addf %393, %394 : vector<2x32xf32>
    %396 = tpu.concatenate %227, %251, %275, %299, %323, %347, %371, %395 in 0 : vector<2x32xf32>, vector<2x32xf32>, vector<2x32xf32>, vector<2x32xf32>, vector<2x32xf32>, vector<2x32xf32>, vector<2x32xf32>, vector<2x32xf32> -> vector<16x32xf32>
    %c0_75 = arith.constant 0 : index
    %c0_76 = arith.constant 0 : index
    %397 = vector.load %arg9[%c0_75, %c0_76] : memref<32x4xf32, #tpu.memory_space<vmem>>, vector<32x4xf32>
    %cst_77 = arith.constant dense<0.000000e+00> : vector<16x4xf32>
    %398 = tpu.matmul %396, %397, %cst_77 {dimension_numbers = #tpu.dot_dimension_numbers<[1], [0], [0], [1], [0, 0, 1, 1], [], []>} : vector<16x32xf32>, vector<32x4xf32>, vector<16x4xf32> -> vector<16x4xf32>
    %c0_78 = arith.constant 0 : index
    %c0_79 = arith.constant 0 : index
    %399 = vector.load %arg10[%c0_78, %c0_79] : memref<1x4xf32, #tpu.memory_space<vmem>>, vector<1x4xf32>
    %400 = vector.broadcast %399 : vector<1x4xf32> to vector<16x4xf32>
    %401 = arith.addf %398, %400 : vector<16x4xf32>
    %c0_80 = arith.constant 0 : index
    %c0_81 = arith.constant 0 : index
    %402 = vector.load %arg11[%c0_80, %c0_81] : memref<16x4xf32, #tpu.memory_space<vmem>>, vector<16x4xf32>
    tpu.vector_store %arg11[%c0_80, %c0_81], %401 {strides = array<i32>} : memref<16x4xf32, #tpu.memory_space<vmem>>, vector<16x4xf32>,
    return
  }
}

</mosaic_0001>

<bundles_post_ra>
// kernel: model_forward.1
= control target key start
LH: loop header
LB: loop body
LE: loop exit
PB: predicated region body
PF: predicated region fallthrough
CT: control target
= control target key end

     0   :  { %16 = vsyncpa [#allocation3], 0  ;;  %s2133_s0 = inlined_call_operand.vmem [shape: f32[16,4], index: 0, kind: input, shape index: {}]   ;;  %s2134_s1 = inlined_call_operand.vmem [shape: f32[4,96], index: 1, kind: input, shape index: {}]   ;;  %s2135_s2 = inlined_call_operand.vmem [shape: f32[32,96], index: 2, kind: input, shape index: {}]   ;;  %s2136_s3 = inlined_call_operand.vmem [shape: f32[1,96], index: 3, kind: input, shape index: {}]   ;;  %s2137_s4 = inlined_call_operand.vmem [shape: f32[1,32], index: 4, kind: input, shape index: {}]   ;;  %s2138_s5 = inlined_call_operand.hbm [shape: f32[32,96], index: 5, kind: input, shape index: {}]   ;;  %s2139_s6 = inlined_call_operand.hbm [shape: f32[32,96], index: 6, kind: input, shape index: {}]   ;;  %s2140_s7 = inlined_call_operand.vmem [shape: f32[1,96], index: 7, kind: input, shape index: {}]   ;;  %s2141_s8 = inlined_call_operand.vmem [shape: f32[1,32], index: 8, kind: input, shape index: {}]   ;;  %s2142_s9 = inlined_call_operand.vmem [shape: f32[32,4], index: 9, kind: input, shape index: {}]   ;;  %s2143_s10 = inlined_call_operand.vmem [shape: f32[1,4], index: 10, kind: input, shape index: {}]   ;;  %s2144_s11 = inlined_call_operand.vmem [shape: f32[16,4], index: 11, kind: output, shape index: {}]  }
   0x1   :  { %s32_s19 = sshll.u32 %s2138_s5, 4  ;;  %s33_s19 = int_to_ptr.hbm [resolvable:$true] %s32_s19 }
   0x2   :  { %17 = vsyncpa [#allocation5], 0  ;;  %s1654_s20 = smov [#allocation2]   ;;  %s45_s24 = sshll.u32 %s2139_s6, 4  ;;  %s46_s24 = int_to_ptr.hbm [resolvable:$true] %s45_s24 }
   0x3   :  { %s34_s21 = sshll.u32 %s1654_s20, 4  ;;  %s1655_s25 = smov 128   ;;  %s35_s21 = int_to_ptr.vmem [resolvable:$true] %s34_s21 }
   0x4   :  { %s1656_s26 = smov 8   ;;  %s1657_s27 = smov [#allocation4]  }
   0x5   :  { %40 = dma.hbm_to_vmem [thread:$0]  %s33_s19, 512, %s35_s21, [#allocation3], %s1655_s25, %s1655_s25, %s1656_s26  }
   0x6   :  { %s47_s28 = sshll.u32 %s1657_s27, 4  ;;  %s48_s28 = int_to_ptr.vmem [resolvable:$true] %s47_s28 }
   0x7   :  { %53 = dma.hbm_to_vmem [thread:$0]  %s46_s24, 512, %s48_s28, [#allocation5], %s1655_s25, %s1655_s25, %s1656_s26  }
   0x8   :  { %1650 = dma.done.wait [#allocation3], 512  }
   0x9   :  { %1651 = vsyncadd [#allocation3], 4294966784 }
   0xa   :  { %1652 = dma.done.wait [#allocation5], 512  }
   0xb   :  { %1653 = vsyncadd [#allocation5], 4294966784  ;;  %vm89_vm0 = vcmask 1043456   ;;  %vm82_vm1 = vcmask 31744   ;;  %v1730_v0 = vld [vmem:[%s2135_s2 + $0x18] sm:$0xff]  ;;  %v1735_v1 = vld [vmem:[%s2135_s2 + $0x10] sm:$0xff] }
   0xc   :  { %v70_v2 = vld [vmem:[%s2134_s1] sm:$0xf]  ;;  %134 = vmatpush.msra.mxu1 %v1730_v0  ;;  %v1745_v3 = vld [vmem:[%s2135_s2 + $0x8] sm:$0xff]  ;;  %202 = vmatpush.msra.mxu3 %v1730_v0  ;;  %s1658_s21 = smov 64   ;;  %v1659_v7 = vmov 0.0   ;;  %vm118_vm6 = vcmask 261120  }
   0xd   :  { %1451 = vmatpush.msk.msra.mxu0 %vm89_vm0, %v70_v2  ;;  %v77_v4 = vld [vmem:[%s2133_s0] sm:$0xff]  ;;  %418 = vmatpush.msra.mxu2 %v1730_v0 }
   0xe   :  { %1452 = vmatmul.msk.f32.vlgmr.msra.gmra.mxu0 %vm82_vm1, %v77_v4  ;;  %v1501_v5 = vld [vmem:[%s2137_s4] ss:$0 sm:$0xff]  ;;  %135 = vmatpush.msra.mxu1 %v1735_v1 }
   0xf   :  { %v1760_v6 = vld [vmem:[%s2135_s2] sm:$0xff]  ;;  %162 = vrot.lane.b32.xlu0 %v1501_v5, %s1658_s21  ;;  %203 = vmatpush.msra.mxu3 %v1735_v1 }
  0x10   :  { %136 = vmatpush.msra.mxu1 %v1745_v3  ;;  %419 = vmatpush.msra.mxu2 %v1735_v1  ;;  %v1795_v11 = vld [vmem:[%s2136_s3] ss:$0 sm:$0xff]  ;;  %s1660_s3 = smov 96  }
  0x11   :  { %204 = vmatpush.msra.mxu3 %v1745_v3  ;;  %556 = vmatpush.msrb.mxu0 %v1730_v0 }
  0x12   :  { %137 = vmatpush.msra.mxu1 %v1760_v6  ;;  %420 = vmatpush.msra.mxu2 %v1745_v3 }
  0x13   :  { %138 = vmatmul.f32.vlgmr.msra.gmra.mxu1 %v1659_v7  ;;  %205 = vmatpush.msra.mxu3 %v1760_v6 }
  0x14   :  { %346 = vmatpush.msrb.mxu1 %v1730_v0  ;;  %421 = vmatpush.msra.mxu2 %v1760_v6 }
  0x15   :  { %274 = vmatpush.msrb.mxu3 %v1730_v0  ;;  %557 = vmatpush.msrb.mxu0 %v1735_v1 }
  0x16   :  { %347 = vmatpush.msrb.mxu1 %v1735_v1 }
  0x17   :  { %275 = vmatpush.msrb.mxu3 %v1735_v1  ;;  %558 = vmatpush.msrb.mxu0 %v1745_v3 }
  0x18   :  { %348 = vmatpush.msrb.mxu1 %v1745_v3 }
  0x19   :  { %276 = vmatpush.msrb.mxu3 %v1745_v3  ;;  %559 = vmatpush.msrb.mxu0 %v1760_v6 }
  0x1a   :  { %349 = vmatpush.msrb.mxu1 %v1760_v6 }
  0x1b   :  { %277 = vmatpush.msrb.mxu3 %v1760_v6 }
  0x1c   :  { %628 = vmatpush.msra.mxu1 %v1730_v0 }
  0x1e   :  { %629 = vmatpush.msra.mxu1 %v1735_v1 }
  0x20   :  { %630 = vmatpush.msra.mxu1 %v1745_v3 }
  0x22   :  { %631 = vmatpush.msra.mxu1 %v1760_v6 }
  0x81   :  { %v1788_v8 = vpop.permute.xlu0 %162 }
  0x8b   :  { %v110_v12 = vpop.f32.mrf.mxu0 }
  0x8c   :  { %v1798_v13 = vadd.f32 %v1795_v11, %v110_v12 }
  0x90   :  { %v139_v9 = vpop.f32.mrf.mxu1 }
  0x91   :  { %v165_v10 = vadd.f32 %v1788_v8, %v139_v9  ;;  %v142_v14 = vadd.f32 %v139_v9, %v1798_v13 }
  0x93   :  { %167 = vrot.lane.b32.xlu0 %v165_v10, %s1658_s21  ;;  %v1454_v15 = vmul.f32 -1.442695, %v142_v14 }
  0x95   :  { %1506 = vpow2.f32 %v1454_v15 }
  0x9b   :  { %v1507_v16 = vpop.eup %1506 }
  0x9c   :  { %v146_v17 = vadd.f32 1.0, %v1507_v16 }
  0x9e   :  { %1508 = vrcp.f32 %v146_v17  ;;  %v158_v23 = vand.u32 2147483648, %v146_v17  ;;  %vm152_vm3 = vweird.f32 %v146_v17  ;;  %v156_v24 = vand.u32 2147483647, %v146_v17 }
  0xa0   :  { %v159_v26 = vor.u32 1.1754944e-38, %v158_v23  ;;  %vm157_vm5 = vcmp.eq.f32.partialorder %v156_v24, 8.507059e+37 }
  0xa4   :  { %v1509_v18 = vpop.eup %1508 }
  0xa5   :  { %v148_v19 = vmul.f32 %v1509_v18, %v146_v17  ;;  %vm153_vm2 = vweird.f32 %v1509_v18 }
  0xa6   :  { %vm154_vm4 = vmor %vm152_vm3, %vm153_vm2 }
  0xa7   :  { %v149_v20 = vsub.f32 1.0, %v148_v19 }
  0xa9   :  { %v150_v21 = vmul.f32 %v1509_v18, %v149_v20 }
  0xab   :  { %v151_v22 = vadd.f32 %v1509_v18, %v150_v21 }
  0xad   :  { %v155_v25 = vsel %vm154_vm4, %v1509_v18, %v151_v22 }
  0xae   :  { %v160_v28 = vsel %vm157_vm5, %v159_v26, %v155_v25 }
  0xaf   :  { %v177_v33 = vsub.f32 1.0, %v160_v28  ;;  %v183_v36 = vmul.f32 0.0, %v160_v28 }
 0x105   :  { %v168_v27 = vpop.permute.xlu0 %167 }
 0x106   :  { %v170_v29 = vmul.f32 %v168_v27, %v160_v28 }
 0x108   :  { %172 = vrot.lane.b32.xlu1 %v170_v29, %s1658_s21 }
 0x17a   :  { %v173_v30 = vpop.permute.xlu1 %172 }
 0x17b   :  { %v175_v31 = vadd.f32 %v173_v30, %v1798_v13 }
 0x17d   :  { %1510 = vtanh.f32 %v175_v31 }
 0x183   :  { %v1511_v32 = vpop.eup %1510 }
 0x184   :  { %179 = vrot.lane.b32.xlu1 %v1511_v32, %s1660_s3 }
 0x1f6   :  { %v180_v34 = vpop.permute.xlu1 %179 }
 0x1f7   :  { %v182_v35 = vmul.f32 %v180_v34, %v177_v33 }
 0x1f9   :  { %v184_v37 = vadd.f32 %v183_v36, %v182_v35 }
 0x1fb   :  { %186 = vrot.lane.b32.xlu2 %v184_v37, %s1660_s3  ;;  %v252_v55 = vrot.slane %v184_v37, 6 }
 0x255   :  { %v1805_v38 = vpop.permute.xlu2 %186 }
 0x256   :  { %1455 = vmatmul.msk.f32.vlgmr.msra.gmra.mxu3 %vm118_vm6, %v1805_v38 }
 0x257   :  { %484 = vmatpush.msra.mxu3 %v1730_v0 }
 0x259   :  { %485 = vmatpush.msra.mxu3 %v1735_v1 }
 0x25b   :  { %486 = vmatpush.msra.mxu3 %v1745_v3 }
 0x25d   :  { %487 = vmatpush.msra.mxu3 %v1760_v6 }
 0x2d9   :  { %v207_v39 = vpop.f32.mrf.mxu3 }
 0x2da   :  { %v211_v40 = vrot.slane %v207_v39, 6  ;;  %v233_v41 = vadd.f32 %v207_v39, %v1788_v8 }
 0x2dc   :  { %v213_v42 = vadd.f32 %v211_v40, %v1798_v13  ;;  %v235_v43 = vrot.slane %v233_v41, 6 }
 0x2de   :  { %v1456_v44 = vmul.f32 -1.442695, %v213_v42  ;;  %236 = vrot.lane.b32.xlu2 %v235_v43, %s1658_s21 }
 0x2e0   :  { %1512 = vpow2.f32 %v1456_v44 }
 0x2e6   :  { %v1513_v45 = vpop.eup %1512 }
 0x2e7   :  { %v217_v46 = vadd.f32 1.0, %v1513_v45 }
 0x2e9   :  { %1514 = vrcp.f32 %v217_v46  ;;  %v229_v50 = vand.u32 2147483648, %v217_v46  ;;  %v227_v52 = vand.u32 2147483647, %v217_v46  ;;  %vm223_vm8 = vweird.f32 %v217_v46 }
 0x2eb   :  { %v230_v54 = vor.u32 1.1754944e-38, %v229_v50  ;;  %vm228_vm10 = vcmp.eq.f32.partialorder %v227_v52, 8.507059e+37 }
 0x2ef   :  { %v1515_v47 = vpop.eup %1514 }
 0x2f0   :  { %v219_v48 = vmul.f32 %v1515_v47, %v217_v46  ;;  %vm224_vm7 = vweird.f32 %v1515_v47 }
 0x2f1   :  { %vm225_vm9 = vmor %vm223_vm8, %vm224_vm7 }
 0x2f2   :  { %v220_v49 = vsub.f32 1.0, %v219_v48 }
 0x2f4   :  { %v221_v51 = vmul.f32 %v1515_v47, %v220_v49 }
 0x2f6   :  { %v222_v53 = vadd.f32 %v1515_v47, %v221_v51 }
 0x2f8   :  { %v226_v56 = vsel %vm225_vm9, %v1515_v47, %v222_v53 }
 0x2f9   :  { %v231_v57 = vsel %vm228_vm10, %v230_v54, %v226_v56 }
 0x2fa   :  { %v254_v58 = vmul.f32 %v252_v55, %v231_v57  ;;  %v246_v0 = vsub.f32 1.0, %v231_v57 }
 0x338   :  { %v237_v59 = vpop.permute.xlu2 %236 }
 0x339   :  { %v239_v60 = vmul.f32 %v237_v59, %v231_v57 }
 0x33b   :  { %241 = vrot.lane.b32.xlu0 %v239_v60, %s1658_s21 }
 0x3ad   :  { %v242_v61 = vpop.permute.xlu0 %241 }
 0x3ae   :  { %v244_v62 = vadd.f32 %v242_v61, %v1798_v13 }
 0x3b0   :  { %1516 = vtanh.f32 %v244_v62 }
 0x3b6   :  { %v1517_v63 = vpop.eup %1516 }
 0x3b7   :  { %248 = vrot.lane.b32.xlu1 %v1517_v63, %s1660_s3 }
 0x429   :  { %v249_v1 = vpop.permute.xlu1 %248 }
 0x42a   :  { %v251_v2 = vmul.f32 %v249_v1, %v246_v0 }
 0x42c   :  { %v255_v3 = vadd.f32 %v254_v58, %v251_v2 }
 0x42e   :  { %v257_v4 = vrot.slane %v255_v3, 2  ;;  %v324_v33 = vrot.slane %v255_v3, 6 }
 0x430   :  { %258 = vrot.lane.b32.xlu2 %v257_v4, %s1660_s3 }
 0x48a   :  { %v1820_v5 = vpop.permute.xlu2 %258 }
 0x48b   :  { %1457 = vmatmul.msk.f32.vlgmr.msrb.gmra.mxu3 %vm118_vm6, %v1820_v5 }
 0x50e   :  { %v279_v6 = vpop.f32.mrf.mxu3 }
 0x50f   :  { %v305_v9 = vadd.f32 %v279_v6, %v1788_v8  ;;  %v283_v12 = vrot.slane %v279_v6, 4 }
 0x511   :  { %v307_v10 = vrot.slane %v305_v9, 4  ;;  %v285_v14 = vadd.f32 %v283_v12, %v1798_v13  ;;  %v1847_v12 = vld [vmem:[#allocation2 + $0x18] sm:$0xff] }
 0x512   :  { %709 = vmatpush.msrb.mxu2 %v1847_v12  ;;  %792 = vmatpush.msra.mxu0 %v1847_v12 }
 0x513   :  { %308 = vrot.lane.b32.xlu0 %v307_v10, %s1658_s21  ;;  %v1458_v15 = vmul.f32 -1.442695, %v285_v14  ;;  %v78_v14 = vld [vmem:[%s2133_s0 + $0x8] sm:$0xff] }
 0x514   :  { %1453 = vmatmul.msk.f32.gmra.mxu0 %vm82_vm1, %v78_v14 }
 0x515   :  { %1518 = vpow2.f32 %v1458_v15  ;;  %v1856_v15 = vld [vmem:[#allocation2 + $0x8] sm:$0xff] }
 0x51b   :  { %v1519_v16 = vpop.eup %1518 }
 0x51c   :  { %v289_v17 = vadd.f32 1.0, %v1519_v16  ;;  %v1860_v16 = vld [vmem:[#allocation2] sm:$0xff] }
 0x51e   :  { %1520 = vrcp.f32 %v289_v17  ;;  %v301_v23 = vand.u32 2147483648, %v289_v17  ;;  %vm295_vm12 = vweird.f32 %v289_v17  ;;  %v299_v24 = vand.u32 2147483647, %v289_v17 }
 0x520   :  { %v302_v26 = vor.u32 1.1754944e-38, %v301_v23  ;;  %vm300_vm14 = vcmp.eq.f32.partialorder %v299_v24, 8.507059e+37 }
 0x524   :  { %v1521_v18 = vpop.eup %1520 }
 0x525   :  { %v291_v19 = vmul.f32 %v1521_v18, %v289_v17  ;;  %vm296_vm11 = vweird.f32 %v1521_v18 }
 0x526   :  { %vm297_vm13 = vmor %vm295_vm12, %vm296_vm11 }
 0x527   :  { %v292_v20 = vsub.f32 1.0, %v291_v19 }
 0x529   :  { %v293_v21 = vmul.f32 %v1521_v18, %v292_v20 }
 0x52b   :  { %v294_v22 = vadd.f32 %v1521_v18, %v293_v21 }
 0x52d   :  { %v298_v25 = vsel %vm297_vm13, %v1521_v18, %v294_v22 }
 0x52e   :  { %v303_v28 = vsel %vm300_vm14, %v302_v26, %v298_v25 }
 0x52f   :  { %v318_v34 = vsub.f32 1.0, %v303_v28  ;;  %v326_v36 = vmul.f32 %v324_v33, %v303_v28 }
 0x585   :  { %v309_v27 = vpop.permute.xlu0 %308 }
 0x586   :  { %v311_v29 = vmul.f32 %v309_v27, %v303_v28 }
 0x588   :  { %313 = vrot.lane.b32.xlu1 %v311_v29, %s1658_s21 }
 0x591   :  { %v113_v19 = vpop.f32.mrf.mxu0 }
 0x592   :  { %v1890_v20 = vadd.f32 %v1795_v11, %v113_v19 }
 0x5fa   :  { %v314_v30 = vpop.permute.xlu1 %313 }
 0x5fb   :  { %v316_v31 = vadd.f32 %v314_v30, %v1798_v13 }
 0x5fd   :  { %1522 = vtanh.f32 %v316_v31 }
 0x603   :  { %v1523_v32 = vpop.eup %1522 }
 0x604   :  { %320 = vrot.lane.b32.xlu2 %v1523_v32, %s1660_s3 }
 0x65e   :  { %v321_v35 = vpop.permute.xlu2 %320 }
 0x65f   :  { %v323_v37 = vmul.f32 %v321_v35, %v318_v34 }
 0x661   :  { %v327_v39 = vadd.f32 %v326_v36, %v323_v37 }
 0x663   :  { %v329_v40 = vrot.slane %v327_v39, 4  ;;  %v396_v1 = vrot.slane %v327_v39, 6 }
 0x665   :  { %330 = vrot.lane.b32.xlu0 %v329_v40, %s1660_s3 }
 0x6d7   :  { %v1831_v41 = vpop.permute.xlu0 %330 }
 0x6d8   :  { %1459 = vmatmul.msk.f32.vlgmr.msrb.gmra.mxu1 %vm118_vm6, %v1831_v41 }
 0x755   :  { %v351_v42 = vpop.f32.mrf.mxu1 }
 0x756   :  { %v377_v43 = vadd.f32 %v351_v42, %v1788_v8  ;;  %v355_v45 = vrot.slane %v351_v42, 2 }
 0x758   :  { %v379_v44 = vrot.slane %v377_v43, 2  ;;  %v357_v46 = vadd.f32 %v355_v45, %v1798_v13  ;;  %v1902_v45 = vld [vmem:[#allocation4 + $0x18] sm:$0xff] }
 0x759   :  { %729 = vmatpush.msrb.mxu3 %v1902_v45  ;;  %817 = vmatpush.msrb.mxu1 %v1902_v45 }
 0x75a   :  { %380 = vrot.lane.b32.xlu1 %v379_v44, %s1658_s21  ;;  %v1460_v47 = vmul.f32 -1.442695, %v357_v46  ;;  %v1904_v46 = vld [vmem:[#allocation4 + $0x10] sm:$0xff] }
 0x75b   :  { %730 = vmatpush.msrb.mxu3 %v1904_v46  ;;  %818 = vmatpush.msrb.mxu1 %v1904_v46 }
 0x75c   :  { %1524 = vpow2.f32 %v1460_v47  ;;  %v1908_v47 = vld [vmem:[#allocation4 + $0x8] sm:$0xff] }
 0x75d   :  { %731 = vmatpush.msrb.mxu3 %v1908_v47  ;;  %819 = vmatpush.msrb.mxu1 %v1908_v47 }
 0x762   :  { %v1525_v48 = vpop.eup %1524 }
 0x763   :  { %v361_v49 = vadd.f32 1.0, %v1525_v48  ;;  %v1912_v48 = vld [vmem:[#allocation4] sm:$0xff] }
 0x764   :  { %732 = vmatpush.msrb.mxu3 %v1912_v48  ;;  %820 = vmatpush.msrb.mxu1 %v1912_v48 }
 0x765   :  { %1526 = vrcp.f32 %v361_v49  ;;  %v373_v55 = vand.u32 2147483648, %v361_v49  ;;  %vm367_vm2 = vweird.f32 %v361_v49  ;;  %v371_v56 = vand.u32 2147483647, %v361_v49 }
 0x767   :  { %v374_v58 = vor.u32 1.1754944e-38, %v373_v55  ;;  %vm372_vm4 = vcmp.eq.f32.partialorder %v371_v56, 8.507059e+37 }
 0x76b   :  { %v1527_v50 = vpop.eup %1526 }
 0x76c   :  { %v363_v51 = vmul.f32 %v1527_v50, %v361_v49  ;;  %vm368_vm15 = vweird.f32 %v1527_v50 }
 0x76d   :  { %vm369_vm3 = vmor %vm367_vm2, %vm368_vm15 }
 0x76e   :  { %v364_v52 = vsub.f32 1.0, %v363_v51 }
 0x770   :  { %v365_v53 = vmul.f32 %v1527_v50, %v364_v52 }
 0x772   :  { %v366_v54 = vadd.f32 %v1527_v50, %v365_v53 }
 0x774   :  { %v370_v57 = vsel %vm369_vm3, %v1527_v50, %v366_v54 }
 0x775   :  { %v375_v60 = vsel %vm372_vm4, %v374_v58, %v370_v57 }
 0x776   :  { %v390_v2 = vsub.f32 1.0, %v375_v60  ;;  %v398_v4 = vmul.f32 %v396_v1, %v375_v60 }
 0x7cc   :  { %v381_v59 = vpop.permute.xlu1 %380 }
 0x7cd   :  { %v383_v61 = vmul.f32 %v381_v59, %v375_v60 }
 0x7cf   :  { %385 = vrot.lane.b32.xlu2 %v383_v61, %s1658_s21 }
 0x829   :  { %v386_v62 = vpop.permute.xlu2 %385 }
 0x82a   :  { %v388_v63 = vadd.f32 %v386_v62, %v1798_v13  ;;  %v1849_v13 = vld [vmem:[#allocation2 + $0x10] sm:$0xff] }
 0x82b   :  { %710 = vmatpush.msrb.mxu2 %v1849_v13  ;;  %793 = vmatpush.msra.mxu0 %v1849_v13 }
 0x82c   :  { %1528 = vtanh.f32 %v388_v63 }
 0x82d   :  { %711 = vmatpush.msrb.mxu2 %v1856_v15  ;;  %794 = vmatpush.msra.mxu0 %v1856_v15 }
 0x82f   :  { %712 = vmatpush.msrb.mxu2 %v1860_v16  ;;  %795 = vmatpush.msra.mxu0 %v1860_v16 }
 0x832   :  { %v1529_v0 = vpop.eup %1528 }
 0x833   :  { %392 = vrot.lane.b32.xlu0 %v1529_v0, %s1660_s3 }
 0x8a5   :  { %v393_v3 = vpop.permute.xlu0 %392 }
 0x8a6   :  { %v395_v6 = vmul.f32 %v393_v3, %v390_v2 }
 0x8a8   :  { %v1841_v9 = vadd.f32 %v398_v4, %v395_v6  ;;  %v1504_v6 = vld [vmem:[%s2141_s8] ss:$0 sm:$0xff] }
 0x8aa   :  { %v401_v10 = vrot.slane %v1841_v9, 6 }
 0x8ac   :  { %402 = vrot.lane.b32.xlu1 %v401_v10, %s1660_s3 }
 0x91e   :  { %v1867_v17 = vpop.permute.xlu1 %402 }
 0x91f   :  { %1461 = vmatmul.msk.f32.vlgmr.msra.gmra.mxu2 %vm118_vm6, %v1867_v17 }
 0x920   :  { %877 = vmatpush.msra.mxu2 %v1847_v12 }
 0x922   :  { %878 = vmatpush.msra.mxu2 %v1849_v13 }
 0x924   :  { %879 = vmatpush.msra.mxu2 %v1856_v15 }
 0x926   :  { %880 = vmatpush.msra.mxu2 %v1860_v16 }
 0x927   :  { %1469 = vmatmul.msk.f32.vlgmr.msrb.gmra.mxu2 %vm118_vm6, %v1805_v38 }
 0x928   :  { %1047 = vmatpush.msrb.mxu2 %v1847_v12 }
 0x92a   :  { %1048 = vmatpush.msrb.mxu2 %v1849_v13 }
 0x92c   :  { %1049 = vmatpush.msrb.mxu2 %v1856_v15 }
 0x92e   :  { %1050 = vmatpush.msrb.mxu2 %v1860_v16 }
 0x92f   :  { %1474 = vmatmul.msk.f32.vlgmr.msra.gmra.mxu2 %vm118_vm6, %v1831_v41 }
 0x930   :  { %1217 = vmatpush.msra.mxu2 %v1847_v12 }
 0x932   :  { %1218 = vmatpush.msra.mxu2 %v1849_v13 }
 0x934   :  { %1219 = vmatpush.msra.mxu2 %v1856_v15 }
 0x936   :  { %1220 = vmatpush.msra.mxu2 %v1860_v16 }
 0x9a2   :  { %v423_v38 = vpop.f32.mrf.mxu2 }
 0x9a3   :  { %v446_v18 = vadd.f32 %v423_v38, %v1788_v8  ;;  %v426_v21 = vadd.f32 %v423_v38, %v1890_v20 }
 0x9a5   :  { %448 = vrot.lane.b32.xlu2 %v446_v18, %s1658_s21  ;;  %v1462_v22 = vmul.f32 -1.442695, %v426_v21 }
 0x9a7   :  { %1530 = vpow2.f32 %v1462_v22 }
 0x9ad   :  { %v1531_v23 = vpop.eup %1530 }
 0x9ae   :  { %v430_v24 = vadd.f32 1.0, %v1531_v23 }
 0x9b0   :  { %1532 = vrcp.f32 %v430_v24  ;;  %v442_v30 = vand.u32 2147483648, %v430_v24  ;;  %vm436_vm7 = vweird.f32 %v430_v24  ;;  %v440_v31 = vand.u32 2147483647, %v430_v24 }
 0x9b2   :  { %v443_v11 = vor.u32 1.1754944e-38, %v442_v30  ;;  %vm441_vm9 = vcmp.eq.f32.partialorder %v440_v31, 8.507059e+37 }
 0x9b6   :  { %v1533_v25 = vpop.eup %1532 }
 0x9b7   :  { %v432_v26 = vmul.f32 %v1533_v25, %v430_v24  ;;  %vm437_vm5 = vweird.f32 %v1533_v25 }
 0x9b8   :  { %vm438_vm8 = vmor %vm436_vm7, %vm437_vm5 }
 0x9b9   :  { %v433_v27 = vsub.f32 1.0, %v432_v26 }
 0x9bb   :  { %v434_v28 = vmul.f32 %v1533_v25, %v433_v27 }
 0x9bd   :  { %v435_v29 = vadd.f32 %v1533_v25, %v434_v28 }
 0x9bf   :  { %v439_v32 = vsel %vm438_vm8, %v1533_v25, %v435_v29  ;;  %v714_v29 = vpop.f32.mrf.mxu2 }
 0x9c0   :  { %v444_v34 = vsel %vm441_vm9, %v443_v11, %v439_v32 }
 0x9c1   :  { %v458_v40 = vsub.f32 1.0, %v444_v34  ;;  %v465_v42 = vmul.f32 %v444_v34, %v401_v10 }
 0x9ff   :  { %v449_v33 = vpop.permute.xlu2 %448 }
 0xa00   :  { %v451_v35 = vmul.f32 %v449_v33, %v444_v34 }
 0xa02   :  { %453 = vrot.lane.b32.xlu0 %v451_v35, %s1658_s21 }
 0xa74   :  { %v454_v36 = vpop.permute.xlu0 %453 }
 0xa75   :  { %v456_v37 = vadd.f32 %v454_v36, %v1890_v20 }
 0xa77   :  { %1534 = vtanh.f32 %v456_v37 }
 0xa7d   :  { %v1535_v39 = vpop.eup %1534 }
 0xa7e   :  { %460 = vrot.lane.b32.xlu1 %v1535_v39, %s1660_s3 }
 0xaf0   :  { %v461_v41 = vpop.permute.xlu1 %460 }
 0xaf1   :  { %v463_v43 = vmul.f32 %v461_v41, %v458_v40 }
 0xaf3   :  { %v1898_v44 = vadd.f32 %v465_v42, %v463_v43 }
 0xaf5   :  { %468 = vrot.lane.b32.xlu2 %v1898_v44, %s1660_s3  ;;  %v534_v38 = vrot.slane %v1898_v44, 6 }
 0xb4f   :  { %v469_v49 = vpop.permute.xlu2 %468 }
 0xb50   :  { %1463 = vmatmul.msk.f32.vlgmr.msra.gmra.mxu3 %vm118_vm6, %v469_v49  ;;  %1480 = vmatmul.msk.f32.vlgmr.msrb.gmra.mxu2 %vm118_vm6, %v469_v49 }
 0xb51   :  { %902 = vmatpush.msra.mxu3 %v1902_v45 }
 0xb53   :  { %903 = vmatpush.msra.mxu3 %v1904_v46 }
 0xb55   :  { %904 = vmatpush.msra.mxu3 %v1908_v47 }
 0xb57   :  { %905 = vmatpush.msra.mxu3 %v1912_v48 }
 0xb58   :  { %733 = vmatmul.f32.vlgmr.msrb.gmra.mxu3 %v1659_v7 }
 0xb59   :  { %1072 = vmatpush.msrb.mxu3 %v1902_v45 }
 0xb5b   :  { %1073 = vmatpush.msrb.mxu3 %v1904_v46 }
 0xb5d   :  { %1074 = vmatpush.msrb.mxu3 %v1908_v47 }
 0xb5f   :  { %1075 = vmatpush.msrb.mxu3 %v1912_v48 }
 0xbd3   :  { %v489_v50 = vpop.f32.mrf.mxu3 }
 0xbd4   :  { %v515_v51 = vadd.f32 %v489_v50, %v1788_v8  ;;  %v493_v53 = vrot.slane %v489_v50, 6 }
 0xbd6   :  { %v517_v52 = vrot.slane %v515_v51, 6  ;;  %v495_v54 = vadd.f32 %v493_v53, %v1890_v20 }
 0xbd8   :  { %518 = vrot.lane.b32.xlu0 %v517_v52, %s1658_s21  ;;  %v1464_v55 = vmul.f32 -1.442695, %v495_v54 }
 0xbda   :  { %1536 = vpow2.f32 %v1464_v55 }
 0xbdb   :  { %v734_v26 = vpop.f32.mrf.mxu3 }
 0xbe0   :  { %v1537_v7 = vpop.eup %1536 }
 0xbe1   :  { %v499_v56 = vadd.f32 1.0, %v1537_v7 }
 0xbe3   :  { %1538 = vrcp.f32 %v499_v56  ;;  %v511_v62 = vand.u32 2147483648, %v499_v56  ;;  %vm505_vm11 = vweird.f32 %v499_v56  ;;  %v509_v63 = vand.u32 2147483647, %v499_v56 }
 0xbe5   :  { %v512_v1 = vor.u32 1.1754944e-38, %v511_v62  ;;  %vm510_vm13 = vcmp.eq.f32.partialorder %v509_v63, 8.507059e+37 }
 0xbe9   :  { %v1539_v57 = vpop.eup %1538 }
 0xbea   :  { %v501_v58 = vmul.f32 %v1539_v57, %v499_v56  ;;  %vm506_vm10 = vweird.f32 %v1539_v57 }
 0xbeb   :  { %vm507_vm12 = vmor %vm505_vm11, %vm506_vm10 }
 0xbec   :  { %v502_v59 = vsub.f32 1.0, %v501_v58 }
 0xbee   :  { %v503_v60 = vmul.f32 %v1539_v57, %v502_v59 }
 0xbf0   :  { %v504_v61 = vadd.f32 %v1539_v57, %v503_v60 }
 0xbf2   :  { %v508_v0 = vsel %vm507_vm12, %v1539_v57, %v504_v61 }
 0xbf3   :  { %v513_v3 = vsel %vm510_vm13, %v512_v1, %v508_v0 }
 0xbf4   :  { %v528_v18 = vsub.f32 1.0, %v513_v3  ;;  %v536_v22 = vmul.f32 %v534_v38, %v513_v3 }
 0xc4a   :  { %v519_v2 = vpop.permute.xlu0 %518 }
 0xc4b   :  { %v521_v4 = vmul.f32 %v519_v2, %v513_v3 }
 0xc4d   :  { %523 = vrot.lane.b32.xlu1 %v521_v4, %s1658_s21 }
 0xc55   :  { %757 = vrot.lane.b32.xlu1 %v1504_v6, %s1658_s21 }
 0xcbf   :  { %v524_v9 = vpop.permute.xlu1 %523 }
 0xcc0   :  { %v526_v10 = vadd.f32 %v524_v9, %v1890_v20 }
 0xcc2   :  { %1540 = vtanh.f32 %v526_v10 }
 0xcc7   :  { %v1944_v25 = vpop.permute.xlu1 %757 }
 0xcc8   :  { %v1541_v14 = vpop.eup %1540  ;;  %v760_v27 = vadd.f32 %v1944_v25, %v734_v26 }
 0xcc9   :  { %530 = vrot.lane.b32.xlu2 %v1541_v14, %s1660_s3 }
 0xd23   :  { %v531_v19 = vpop.permute.xlu2 %530 }
 0xd24   :  { %v533_v21 = vmul.f32 %v531_v19, %v528_v18 }
 0xd26   :  { %v1940_v23 = vadd.f32 %v536_v22, %v533_v21 }
 0xd28   :  { %v539_v24 = vrot.slane %v1940_v23, 2  ;;  %v606_v61 = vrot.slane %v1940_v23, 6 }
 0xd2a   :  { %540 = vrot.lane.b32.xlu0 %v539_v24, %s1660_s3 }
 0xd32   :  { %762 = vrot.lane.b32.xlu0 %v760_v27, %s1658_s21 }
 0xd9c   :  { %v541_v28 = vpop.permute.xlu0 %540 }
 0xd9d   :  { %1465 = vmatmul.msk.f32.vlgmr.msrb.gmra.mxu0 %vm118_vm6, %v541_v28 }
 0xd9e   :  { %962 = vmatpush.msrb.mxu0 %v1847_v12 }
 0xda0   :  { %963 = vmatpush.msrb.mxu0 %v1849_v13 }
 0xda2   :  { %964 = vmatpush.msrb.mxu0 %v1856_v15 }
 0xda4   :  { %965 = vmatpush.msrb.mxu0 %v1860_v16  ;;  %v763_v49 = vpop.permute.xlu0 %762 }
 0xda5   :  { %1471 = vmatmul.msk.f32.vlgmr.msra.gmra.mxu0 %vm118_vm6, %v1820_v5  ;;  %v1969_v5 = vld [vmem:[%s2140_s7] ss:$0 sm:$0xff] }
 0xda6   :  { %1132 = vmatpush.msra.mxu0 %v1847_v12  ;;  %v715_v30 = vadd.f32 %v1969_v5, %v714_v29 }
 0xda8   :  { %1133 = vmatpush.msra.mxu0 %v1849_v13  ;;  %v737_v31 = vadd.f32 %v734_v26, %v715_v30 }
 0xdaa   :  { %1134 = vmatpush.msra.mxu0 %v1856_v15 }
 0xdac   :  { %1135 = vmatpush.msra.mxu0 %v1860_v16 }
 0xdad   :  { %1477 = vmatmul.msk.f32.vlgmr.msrb.gmra.mxu0 %vm118_vm6, %v1867_v17  ;;  %v1470_v17 = vmul.f32 -1.442695, %v737_v31 }
 0xdae   :  { %1308 = vmatpush.msrb.mxu0 %v1847_v12 }
 0xdaf   :  { %1542 = vpow2.f32 %v1470_v17 }
 0xdb0   :  { %1309 = vmatpush.msrb.mxu0 %v1849_v13 }
 0xdb2   :  { %1310 = vmatpush.msrb.mxu0 %v1856_v15 }
 0xdb4   :  { %1311 = vmatpush.msrb.mxu0 %v1860_v16 }
 0xdb5   :  { %1483 = vmatmul.msk.f32.vlgmr.msra.gmra.mxu0 %vm118_vm6, %v541_v28  ;;  %v1543_v12 = vpop.eup %1542 }
 0xdb6   :  { %v741_v32 = vadd.f32 1.0, %v1543_v12 }
 0xdb8   :  { %1544 = vrcp.f32 %v741_v32  ;;  %v753_v40 = vand.u32 2147483648, %v741_v32  ;;  %vm747_vm15 = vweird.f32 %v741_v32  ;;  %v751_v41 = vand.u32 2147483647, %v741_v32 }
 0xdba   :  { %v754_v44 = vor.u32 1.1754944e-38, %v753_v40  ;;  %vm752_vm3 = vcmp.eq.f32.partialorder %v751_v41, 8.507059e+37 }
 0xdbe   :  { %v1545_v13 = vpop.eup %1544 }
 0xdbf   :  { %v743_v15 = vmul.f32 %v1545_v13, %v741_v32  ;;  %vm748_vm14 = vweird.f32 %v1545_v13 }
 0xdc0   :  { %vm749_vm2 = vmor %vm747_vm15, %vm748_vm14 }
 0xdc1   :  { %v744_v11 = vsub.f32 1.0, %v743_v15 }
 0xdc3   :  { %v745_v16 = vmul.f32 %v1545_v13, %v744_v11 }
 0xdc5   :  { %v746_v36 = vadd.f32 %v1545_v13, %v745_v16 }
 0xdc7   :  { %v750_v43 = vsel %vm749_vm2, %v1545_v13, %v746_v36 }
 0xdc8   :  { %v755_v50 = vsel %vm752_vm3, %v754_v44, %v750_v43 }
 0xdc9   :  { %v765_v51 = vmul.f32 %v763_v49, %v755_v50  ;;  %v772_v38 = vsub.f32 1.0, %v755_v50  ;;  %v778_v19 = vmul.f32 0.0, %v755_v50 }
 0xe1a   :  { %v561_v33 = vpop.f32.mrf.mxu0 }
 0xe1b   :  { %v565_v34 = vrot.slane %v561_v33, 4  ;;  %v587_v35 = vadd.f32 %v561_v33, %v1788_v8 }
 0xe1d   :  { %v567_v37 = vadd.f32 %v565_v34, %v1890_v20  ;;  %v589_v39 = vrot.slane %v587_v35, 4 }
 0xe1f   :  { %v1466_v42 = vmul.f32 -1.442695, %v567_v37  ;;  %590 = vrot.lane.b32.xlu2 %v589_v39, %s1658_s21 }
 0xe21   :  { %1546 = vpow2.f32 %v1466_v42 }
 0xe22   :  { %v797_v32 = vpop.f32.mrf.mxu0 }
 0xe23   :  { %v798_v13 = vadd.f32 %v1969_v5, %v797_v32 }
 0xe27   :  { %v1547_v52 = vpop.eup %1546  ;;  %767 = vrot.lane.b32.xlu2 %v765_v51, %s1658_s21 }
 0xe28   :  { %v571_v53 = vadd.f32 1.0, %v1547_v52 }
 0xe2a   :  { %1548 = vrcp.f32 %v571_v53  ;;  %v583_v56 = vand.u32 2147483648, %v571_v53  ;;  %v581_v58 = vand.u32 2147483647, %v571_v53  ;;  %vm577_vm5 = vweird.f32 %v571_v53 }
 0xe2c   :  { %v584_v60 = vor.u32 1.1754944e-38, %v583_v56  ;;  %vm582_vm8 = vcmp.eq.f32.partialorder %v581_v58, 8.507059e+37 }
 0xe30   :  { %v1549_v54 = vpop.eup %1548 }
 0xe31   :  { %v573_v55 = vmul.f32 %v1549_v54, %v571_v53  ;;  %vm578_vm4 = vweird.f32 %v1549_v54 }
 0xe32   :  { %vm579_vm7 = vmor %vm577_vm5, %vm578_vm4 }
 0xe33   :  { %v574_v7 = vsub.f32 1.0, %v573_v55 }
 0xe35   :  { %v575_v57 = vmul.f32 %v1549_v54, %v574_v7 }
 0xe37   :  { %v576_v59 = vadd.f32 %v1549_v54, %v575_v57 }
 0xe39   :  { %v580_v62 = vsel %vm579_vm7, %v1549_v54, %v576_v59 }
 0xe3a   :  { %v585_v63 = vsel %vm582_vm8, %v584_v60, %v580_v62 }
 0xe3b   :  { %v608_v0 = vmul.f32 %v606_v61, %v585_v63  ;;  %v600_v23 = vsub.f32 1.0, %v585_v63  ;;  %v882_v61 = vpop.f32.mrf.mxu2 }
 0xe3c   :  { %v883_v62 = vadd.f32 %v1969_v5, %v882_v61 }
 0xe79   :  { %v591_v1 = vpop.permute.xlu2 %590 }
 0xe7a   :  { %v593_v2 = vmul.f32 %v591_v1, %v585_v63 }
 0xe7c   :  { %595 = vrot.lane.b32.xlu1 %v593_v2, %s1658_s21 }
 0xe81   :  { %v768_v3 = vpop.permute.xlu2 %767 }
 0xe82   :  { %v770_v4 = vadd.f32 %v768_v3, %v715_v30 }
 0xe84   :  { %1550 = vtanh.f32 %v770_v4 }
 0xe8a   :  { %v1551_v6 = vpop.eup %1550 }
 0xe8b   :  { %774 = vrot.lane.b32.xlu1 %v1551_v6, %s1660_s3 }
 0xeee   :  { %v596_v9 = vpop.permute.xlu1 %595 }
 0xeef   :  { %v598_v10 = vadd.f32 %v596_v9, %v1890_v20 }
 0xef1   :  { %1552 = vtanh.f32 %v598_v10 }
 0xef7   :  { %v1553_v14 = vpop.eup %1552 }
 0xef8   :  { %602 = vrot.lane.b32.xlu0 %v1553_v14, %s1660_s3 }
 0xefd   :  { %v775_v18 = vpop.permute.xlu1 %774 }
 0xefe   :  { %v777_v21 = vmul.f32 %v775_v18, %v772_v38 }
 0xf00   :  { %v1981_v22 = vadd.f32 %v778_v19, %v777_v21 }
 0xf02   :  { %801 = vrot.lane.b32.xlu0 %v1981_v22, %s1660_s3 }
 0xf6a   :  { %v603_v24 = vpop.permute.xlu0 %602 }
 0xf6b   :  { %v605_v26 = vmul.f32 %v603_v24, %v600_v23 }
 0xf6d   :  { %v1985_v27 = vadd.f32 %v608_v0, %v605_v26 }
 0xf6f   :  { %v611_v28 = vrot.slane %v1985_v27, 4 }
 0xf71   :  { %612 = vrot.lane.b32.xlu2 %v611_v28, %s1660_s3 }
 0xf74   :  { %v802_v30 = vpop.permute.xlu0 %801 }
 0xfcb   :  { %v613_v29 = vpop.permute.xlu2 %612 }
 0xfcc   :  { %1467 = vmatmul.msk.f32.vlgmr.msra.gmra.mxu1 %vm118_vm6, %v613_v29  ;;  %1486 = vmatmul.msk.f32.vlgmr.msra.gmra.mxu2 %vm118_vm6, %v613_v29 }
 0xfcd   :  { %987 = vmatpush.msra.mxu1 %v1902_v45 }
 0xfcf   :  { %988 = vmatpush.msra.mxu1 %v1904_v46 }
 0xfd1   :  { %989 = vmatpush.msra.mxu1 %v1908_v47 }
 0xfd3   :  { %990 = vmatpush.msra.mxu1 %v1912_v48 }
 0xfd4   :  { %1472 = vmatmul.msk.f32.vlgmr.msrb.gmra.mxu1 %vm118_vm6, %v802_v30 }
 0xfd5   :  { %1157 = vmatpush.msrb.mxu1 %v1902_v45 }
 0xfd7   :  { %1158 = vmatpush.msrb.mxu1 %v1904_v46 }
 0xfd9   :  { %1159 = vmatpush.msrb.mxu1 %v1908_v47 }
 0xfdb   :  { %1160 = vmatpush.msrb.mxu1 %v1912_v48 }
0x1049   :  { %v2000_v31 = vpop.f32.mrf.mxu1 }
0x1051   :  { %v822_v17 = vpop.f32.mrf.mxu1 }
0x1052   :  { %v845_v12 = vadd.f32 %v822_v17, %v1944_v25  ;;  %v825_v15 = vadd.f32 %v822_v17, %v798_v13 }
0x1054   :  { %847 = vrot.lane.b32.xlu1 %v845_v12, %s1658_s21  ;;  %v1473_v11 = vmul.f32 -1.442695, %v825_v15 }
0x1056   :  { %1554 = vpow2.f32 %v1473_v11 }
0x105c   :  { %v1555_v16 = vpop.eup %1554 }
0x105d   :  { %v829_v33 = vadd.f32 1.0, %v1555_v16 }
0x105f   :  { %1556 = vrcp.f32 %v829_v33  ;;  %v841_v40 = vand.u32 2147483648, %v829_v33  ;;  %vm835_vm10 = vweird.f32 %v829_v33  ;;  %v839_v41 = vand.u32 2147483647, %v829_v33 }
0x1061   :  { %v842_v43 = vor.u32 1.1754944e-38, %v841_v40  ;;  %vm840_vm12 = vcmp.eq.f32.partialorder %v839_v41, 8.507059e+37 }
0x1065   :  { %v1557_v34 = vpop.eup %1556 }
0x1066   :  { %v831_v35 = vmul.f32 %v1557_v34, %v829_v33  ;;  %vm836_vm9 = vweird.f32 %v1557_v34  ;;  %v967_v33 = vpop.f32.mrf.mxu0 }
0x1067   :  { %vm837_vm11 = vmor %vm835_vm10, %vm836_vm9 }
0x1068   :  { %v832_v36 = vsub.f32 1.0, %v831_v35 }
0x106a   :  { %v833_v37 = vmul.f32 %v1557_v34, %v832_v36 }
0x106c   :  { %v834_v39 = vadd.f32 %v1557_v34, %v833_v37 }
0x106e   :  { %v838_v42 = vsel %vm837_vm11, %v1557_v34, %v834_v39  ;;  %v968_v34 = vadd.f32 %v1969_v5, %v967_v33 }
0x106f   :  { %v843_v49 = vsel %vm840_vm12, %v842_v43, %v838_v42 }
0x1070   :  { %v857_v54 = vsub.f32 1.0, %v843_v49  ;;  %v863_v7 = vmul.f32 %v843_v49, %v1981_v22 }
0x10c6   :  { %v848_v44 = vpop.permute.xlu1 %847 }
0x10c7   :  { %v850_v50 = vmul.f32 %v848_v44, %v843_v49 }
0x10c9   :  { %852 = vrot.lane.b32.xlu2 %v850_v50, %s1658_s21 }
0x1123   :  { %v853_v51 = vpop.permute.xlu2 %852 }
0x1124   :  { %v855_v52 = vadd.f32 %v853_v51, %v798_v13 }
0x1126   :  { %1558 = vtanh.f32 %v855_v52 }
0x112c   :  { %v1559_v53 = vpop.eup %1558 }
0x112d   :  { %859 = vrot.lane.b32.xlu0 %v1559_v53, %s1660_s3 }
0x119f   :  { %v860_v55 = vpop.permute.xlu0 %859 }
0x11a0   :  { %v862_v56 = vmul.f32 %v860_v55, %v857_v54 }
0x11a2   :  { %v2008_v57 = vadd.f32 %v863_v7, %v862_v56 }
0x11a4   :  { %886 = vrot.lane.b32.xlu1 %v2008_v57, %s1660_s3 }
0x1216   :  { %v887_v58 = vpop.permute.xlu1 %886 }
0x1217   :  { %1475 = vmatmul.msk.f32.vlgmr.msra.gmra.mxu3 %vm118_vm6, %v887_v58 }
0x1218   :  { %1242 = vmatpush.msra.mxu3 %v1902_v45 }
0x121a   :  { %1243 = vmatpush.msra.mxu3 %v1904_v46 }
0x121c   :  { %1244 = vmatpush.msra.mxu3 %v1908_v47 }
0x121e   :  { %1245 = vmatpush.msra.mxu3 %v1912_v48 }
0x129a   :  { %v907_v59 = vpop.f32.mrf.mxu3 }
0x129b   :  { %v930_v60 = vadd.f32 %v907_v59, %v1944_v25  ;;  %v910_v63 = vadd.f32 %v907_v59, %v883_v62 }
0x129d   :  { %932 = vrot.lane.b32.xlu2 %v930_v60, %s1658_s21  ;;  %v1476_v0 = vmul.f32 -1.442695, %v910_v63  ;;  %v1052_v63 = vpop.f32.mrf.mxu2 }
0x129f   :  { %1560 = vpow2.f32 %v1476_v0  ;;  %v1053_v0 = vadd.f32 %v1969_v5, %v1052_v63 }
0x12a5   :  { %v1561_v1 = vpop.eup %1560 }
0x12a6   :  { %v914_v2 = vadd.f32 1.0, %v1561_v1 }
0x12a8   :  { %1562 = vrcp.f32 %v914_v2  ;;  %v926_v14 = vand.u32 2147483648, %v914_v2  ;;  %vm920_vm14 = vweird.f32 %v914_v2  ;;  %v924_v38 = vand.u32 2147483647, %v914_v2 }
0x12aa   :  { %v927_v19 = vor.u32 1.1754944e-38, %v926_v14  ;;  %vm925_vm2 = vcmp.eq.f32.partialorder %v924_v38, 8.507059e+37 }
0x12ae   :  { %v1563_v3 = vpop.eup %1562 }
0x12af   :  { %v916_v4 = vmul.f32 %v1563_v3, %v914_v2  ;;  %vm921_vm13 = vweird.f32 %v1563_v3 }
0x12b0   :  { %vm922_vm15 = vmor %vm920_vm14, %vm921_vm13 }
0x12b1   :  { %v917_v6 = vsub.f32 1.0, %v916_v4 }
0x12b3   :  { %v918_v9 = vmul.f32 %v1563_v3, %v917_v6 }
0x12b5   :  { %v919_v10 = vadd.f32 %v1563_v3, %v918_v9 }
0x12b7   :  { %v923_v18 = vsel %vm922_vm15, %v1563_v3, %v919_v10 }
0x12b8   :  { %v928_v23 = vsel %vm925_vm2, %v927_v19, %v923_v18 }
0x12b9   :  { %v942_v30 = vsub.f32 1.0, %v928_v23  ;;  %v948_v12 = vmul.f32 %v928_v23, %v2008_v57 }
0x12f7   :  { %v933_v21 = vpop.permute.xlu2 %932 }
0x12f8   :  { %v935_v24 = vmul.f32 %v933_v21, %v928_v23 }
0x12fa   :  { %937 = vrot.lane.b32.xlu0 %v935_v24, %s1658_s21 }
0x136c   :  { %v938_v26 = vpop.permute.xlu0 %937 }
0x136d   :  { %v940_v28 = vadd.f32 %v938_v26, %v883_v62 }
0x136f   :  { %1564 = vtanh.f32 %v940_v28 }
0x1375   :  { %v1565_v29 = vpop.eup %1564 }
0x1376   :  { %944 = vrot.lane.b32.xlu1 %v1565_v29, %s1660_s3 }
0x13e8   :  { %v945_v17 = vpop.permute.xlu1 %944 }
0x13e9   :  { %v947_v32 = vmul.f32 %v945_v17, %v942_v30 }
0x13eb   :  { %v2023_v13 = vadd.f32 %v948_v12, %v947_v32 }
0x13ed   :  { %971 = vrot.lane.b32.xlu2 %v2023_v13, %s1660_s3 }
0x1447   :  { %v972_v15 = vpop.permute.xlu2 %971 }
0x1448   :  { %1478 = vmatmul.msk.f32.vlgmr.msra.gmra.mxu1 %vm118_vm6, %v972_v15 }
0x1449   :  { %1333 = vmatpush.msra.mxu1 %v1902_v45 }
0x144b   :  { %1334 = vmatpush.msra.mxu1 %v1904_v46 }
0x144d   :  { %1335 = vmatpush.msra.mxu1 %v1908_v47 }
0x144f   :  { %1336 = vmatpush.msra.mxu1 %v1912_v48 }
0x14c5   :  { %v992_v11 = vpop.f32.mrf.mxu1 }
0x14c6   :  { %v1015_v16 = vadd.f32 %v992_v11, %v1944_v25  ;;  %v995_v35 = vadd.f32 %v992_v11, %v968_v34 }
0x14c8   :  { %1017 = vrot.lane.b32.xlu0 %v1015_v16, %s1658_s21  ;;  %v1479_v36 = vmul.f32 -1.442695, %v995_v35 }
0x14ca   :  { %1566 = vpow2.f32 %v1479_v36  ;;  %v1137_v36 = vpop.f32.mrf.mxu0 }
0x14d0   :  { %v1567_v37 = vpop.eup %1566 }
0x14d1   :  { %v999_v39 = vadd.f32 1.0, %v1567_v37  ;;  %v1138_v37 = vadd.f32 %v1969_v5, %v1137_v36 }
0x14d3   :  { %1568 = vrcp.f32 %v999_v39  ;;  %v1011_v48 = vand.u32 2147483648, %v999_v39  ;;  %vm1005_vm4 = vweird.f32 %v999_v39  ;;  %v1009_v42 = vand.u32 2147483647, %v999_v39 }
0x14d5   :  { %v1012_v44 = vor.u32 1.1754944e-38, %v1011_v48  ;;  %vm1010_vm7 = vcmp.eq.f32.partialorder %v1009_v42, 8.507059e+37 }
0x14d9   :  { %v1569_v45 = vpop.eup %1568 }
0x14da   :  { %v1001_v46 = vmul.f32 %v1569_v45, %v999_v39  ;;  %vm1006_vm3 = vweird.f32 %v1569_v45 }
0x14db   :  { %vm1007_vm5 = vmor %vm1005_vm4, %vm1006_vm3 }
0x14dc   :  { %v1002_v40 = vsub.f32 1.0, %v1001_v46 }
0x14de   :  { %v1003_v47 = vmul.f32 %v1569_v45, %v1002_v40 }
0x14e0   :  { %v1004_v41 = vadd.f32 %v1569_v45, %v1003_v47 }
0x14e2   :  { %v1008_v43 = vsel %vm1007_vm5, %v1569_v45, %v1004_v41 }
0x14e3   :  { %v1013_v50 = vsel %vm1010_vm7, %v1012_v44, %v1008_v43 }
0x14e4   :  { %v1027_v55 = vsub.f32 1.0, %v1013_v50  ;;  %v1033_v56 = vmul.f32 %v1013_v50, %v2023_v13 }
0x153a   :  { %v1018_v49 = vpop.permute.xlu0 %1017 }
0x153b   :  { %v1020_v51 = vmul.f32 %v1018_v49, %v1013_v50 }
0x153d   :  { %1022 = vrot.lane.b32.xlu1 %v1020_v51, %s1658_s21 }
0x15af   :  { %v1023_v52 = vpop.permute.xlu1 %1022 }
0x15b0   :  { %v1025_v53 = vadd.f32 %v1023_v52, %v968_v34 }
0x15b2   :  { %1570 = vtanh.f32 %v1025_v53 }
0x15b8   :  { %v1571_v54 = vpop.eup %1570 }
0x15b9   :  { %1029 = vrot.lane.b32.xlu2 %v1571_v54, %s1660_s3 }
0x1613   :  { %v1030_v7 = vpop.permute.xlu2 %1029 }
0x1614   :  { %v1032_v58 = vmul.f32 %v1030_v7, %v1027_v55 }
0x1616   :  { %v2038_v59 = vadd.f32 %v1033_v56, %v1032_v58  ;;  %v659_v58 = vadd.f32 %v2000_v31, %v1788_v8 }
0x1618   :  { %1056 = vrot.lane.b32.xlu0 %v2038_v59, %s1660_s3 }
0x168a   :  { %v1057_v60 = vpop.permute.xlu0 %1056 }
0x168b   :  { %1481 = vmatmul.msk.f32.vlgmr.msrb.gmra.mxu3 %vm118_vm6, %v1057_v60  ;;  %v661_v60 = vrot.slane %v659_v58, 2 }
0x170e   :  { %v1077_v61 = vpop.f32.mrf.mxu3 }
0x170f   :  { %v1100_v62 = vadd.f32 %v1077_v61, %v1944_v25  ;;  %v1080_v1 = vadd.f32 %v1077_v61, %v1053_v0 }
0x1711   :  { %1102 = vrot.lane.b32.xlu1 %v1100_v62, %s1658_s21  ;;  %v1482_v2 = vmul.f32 -1.442695, %v1080_v1 }
0x1713   :  { %1572 = vpow2.f32 %v1482_v2 }
0x1719   :  { %v1573_v3 = vpop.eup %1572 }
0x171a   :  { %v1084_v4 = vadd.f32 1.0, %v1573_v3  ;;  %v637_v3 = vrot.slane %v2000_v31, 2 }
0x171c   :  { %1574 = vrcp.f32 %v1084_v4  ;;  %v1096_v18 = vand.u32 2147483648, %v1084_v4  ;;  %vm1090_vm9 = vweird.f32 %v1084_v4  ;;  %v1094_v19 = vand.u32 2147483647, %v1084_v4 }
0x171d   :  { %v639_v8 = vadd.f32 %v637_v3, %v1890_v20 }
0x171e   :  { %v1097_v23 = vor.u32 1.1754944e-38, %v1096_v18  ;;  %vm1095_vm11 = vcmp.eq.f32.partialorder %v1094_v19, 8.507059e+37 }
0x1722   :  { %v1575_v6 = vpop.eup %1574 }
0x1723   :  { %v1086_v9 = vmul.f32 %v1575_v6, %v1084_v4  ;;  %vm1091_vm8 = vweird.f32 %v1575_v6  ;;  %v1468_v4 = vmul.f32 -1.442695, %v639_v8 }
0x1724   :  { %vm1092_vm10 = vmor %vm1090_vm9, %vm1091_vm8 }
0x1725   :  { %v1087_v10 = vsub.f32 1.0, %v1086_v9 }
0x1727   :  { %v1088_v14 = vmul.f32 %v1575_v6, %v1087_v10 }
0x1729   :  { %v1089_v38 = vadd.f32 %v1575_v6, %v1088_v14 }
0x172b   :  { %v1093_v21 = vsel %vm1092_vm10, %v1575_v6, %v1089_v38 }
0x172c   :  { %v1098_v26 = vsel %vm1095_vm11, %v1097_v23, %v1093_v21  ;;  %vm1394_vm11 = vcmask 1041408  }
0x172d   :  { %v1112_v12 = vsub.f32 1.0, %v1098_v26  ;;  %v1118_v15 = vmul.f32 %v1098_v26, %v2038_v59 }
0x1783   :  { %v1103_v24 = vpop.permute.xlu1 %1102 }
0x1784   :  { %v1105_v28 = vmul.f32 %v1103_v24, %v1098_v26 }
0x1786   :  { %1107 = vrot.lane.b32.xlu2 %v1105_v28, %s1658_s21 }
0x17e0   :  { %v1108_v29 = vpop.permute.xlu2 %1107 }
0x17e1   :  { %v1110_v30 = vadd.f32 %v1108_v29, %v1053_v0 }
0x17e3   :  { %1576 = vtanh.f32 %v1110_v30 }
0x17e9   :  { %v1577_v17 = vpop.eup %1576 }
0x17ea   :  { %1114 = vrot.lane.b32.xlu0 %v1577_v17, %s1660_s3 }
0x185c   :  { %v1115_v32 = vpop.permute.xlu0 %1114 }
0x185d   :  { %v1117_v11 = vmul.f32 %v1115_v32, %v1112_v12  ;;  %v1222_v12 = vpop.f32.mrf.mxu2 }
0x185e   :  { %v1223_v32 = vadd.f32 %v1969_v5, %v1222_v12 }
0x185f   :  { %v2049_v16 = vadd.f32 %v1118_v15, %v1117_v11 }
0x1861   :  { %1141 = vrot.lane.b32.xlu1 %v2049_v16, %s1660_s3 }
0x18d3   :  { %v1142_v33 = vpop.permute.xlu1 %1141 }
0x18d4   :  { %1484 = vmatmul.msk.f32.vlgmr.msrb.gmra.mxu1 %vm118_vm6, %v1142_v33 }
0x1951   :  { %v1162_v34 = vpop.f32.mrf.mxu1 }
0x1952   :  { %v1185_v35 = vadd.f32 %v1162_v34, %v1944_v25  ;;  %v1165_v39 = vadd.f32 %v1162_v34, %v1138_v37 }
0x1954   :  { %1187 = vrot.lane.b32.xlu2 %v1185_v35, %s1658_s21  ;;  %v1485_v45 = vmul.f32 -1.442695, %v1165_v39 }
0x1956   :  { %1578 = vpow2.f32 %v1485_v45 }
0x195c   :  { %v1579_v46 = vpop.eup %1578 }
0x195d   :  { %v1169_v40 = vadd.f32 1.0, %v1579_v46 }
0x195f   :  { %1580 = vrcp.f32 %v1169_v40  ;;  %v1181_v44 = vand.u32 2147483648, %v1169_v40  ;;  %vm1175_vm13 = vweird.f32 %v1169_v40  ;;  %v1179_v49 = vand.u32 2147483647, %v1169_v40 }
0x1961   :  { %v1182_v51 = vor.u32 1.1754944e-38, %v1181_v44  ;;  %vm1180_vm15 = vcmp.eq.f32.partialorder %v1179_v49, 8.507059e+37 }
0x1965   :  { %v1581_v47 = vpop.eup %1580 }
0x1966   :  { %v1171_v41 = vmul.f32 %v1581_v47, %v1169_v40  ;;  %vm1176_vm12 = vweird.f32 %v1581_v47 }
0x1967   :  { %vm1177_vm14 = vmor %vm1175_vm13, %vm1176_vm12  ;;  %vm1397_vm12 = vcmask 1045504  }
0x1968   :  { %v1172_v48 = vsub.f32 1.0, %v1171_v41 }
0x196a   :  { %v1173_v42 = vmul.f32 %v1581_v47, %v1172_v48 }
0x196c   :  { %v1174_v43 = vadd.f32 %v1581_v47, %v1173_v42 }
0x196e   :  { %v1178_v50 = vsel %vm1177_vm14, %v1581_v47, %v1174_v43 }
0x196f   :  { %v1183_v53 = vsel %vm1180_vm15, %v1182_v51, %v1178_v50 }
0x1970   :  { %v1197_v61 = vsub.f32 1.0, %v1183_v53  ;;  %v1203_v63 = vmul.f32 %v1183_v53, %v2049_v16 }
0x19ae   :  { %v1188_v52 = vpop.permute.xlu2 %1187 }
0x19af   :  { %v1190_v54 = vmul.f32 %v1188_v52, %v1183_v53 }
0x19b1   :  { %1192 = vrot.lane.b32.xlu0 %v1190_v54, %s1658_s21  ;;  %v678_v54 = vrot.slane %v1985_v27, 6 }
0x1a23   :  { %v1193_v55 = vpop.permute.xlu0 %1192 }
0x1a24   :  { %v1195_v7 = vadd.f32 %v1193_v55, %v1138_v37 }
0x1a26   :  { %1582 = vtanh.f32 %v1195_v7 }
0x1a27   :  { %1584 = vpow2.f32 %v1468_v4 }
0x1a2c   :  { %v1583_v56 = vpop.eup %1582 }
0x1a2d   :  { %1199 = vrot.lane.b32.xlu1 %v1583_v56, %s1660_s3  ;;  %v1585_v6 = vpop.eup %1584 }
0x1a2e   :  { %v643_v9 = vadd.f32 1.0, %v1585_v6  ;;  %v1381_v6 = vrot.slane %v2008_v57, 6 }
0x1a30   :  { %1586 = vrcp.f32 %v643_v9  ;;  %v655_v24 = vand.u32 2147483648, %v643_v9  ;;  %vm649_vm3 = vweird.f32 %v643_v9  ;;  %v653_v26 = vand.u32 2147483647, %v643_v9 }
0x1a32   :  { %v656_v28 = vor.u32 1.1754944e-38, %v655_v24  ;;  %vm654_vm5 = vcmp.eq.f32.partialorder %v653_v26, 8.507059e+37  ;;  %v1403_v24 = vld [vmem:[%s2142_s9 + $0x8] sm:$0xff] }
0x1a35   :  { %662 = vrot.lane.b32.xlu1 %v661_v60, %s1658_s21 }
0x1a36   :  { %v1587_v10 = vpop.eup %1586 }
0x1a37   :  { %v645_v14 = vmul.f32 %v1587_v10, %v643_v9  ;;  %vm650_vm2 = vweird.f32 %v1587_v10  ;;  %v1383_v9 = vrot.slane %v2023_v13, 4 }
0x1a38   :  { %vm651_vm4 = vmor %vm649_vm3, %vm650_vm2 }
0x1a39   :  { %v646_v38 = vsub.f32 1.0, %v645_v14  ;;  %v1395_v14 = vsel %vm1394_vm11, %v1981_v22, %v1381_v6  ;;  %v1404_v22 = vld [vmem:[%s2142_s9 + $0x10] sm:$0xff] }
0x1a3b   :  { %v647_v18 = vmul.f32 %v1587_v10, %v646_v38  ;;  %v1396_v38 = vsel %vm89_vm0, %v1395_v14, %v1383_v9 }
0x1a3d   :  { %v648_v21 = vadd.f32 %v1587_v10, %v647_v18 }
0x1a3f   :  { %v652_v31 = vsel %vm651_vm4, %v1587_v10, %v648_v21  ;;  %v1385_v10 = vrot.slane %v2038_v59, 2  ;;  %v1405_v59 = vld [vmem:[%s2142_s9 + $0x18] sm:$0xff] }
0x1a40   :  { %v657_v30 = vsel %vm654_vm5, %v656_v28, %v652_v31  ;;  %1432 = vmatpush.msrb.mxu2 %v1405_v59 }
0x1a41   :  { %v672_v55 = vsub.f32 1.0, %v657_v30  ;;  %v680_v56 = vmul.f32 %v678_v54, %v657_v30  ;;  %v1398_v18 = vsel %vm1397_vm12, %v1396_v38, %v1385_v10 }
0x1a42   :  { %1433 = vmatpush.msrb.mxu2 %v1404_v22 }
0x1a44   :  { %1434 = vmatpush.msrb.mxu2 %v1403_v24 }
0x1a9f   :  { %v1200_v62 = vpop.permute.xlu1 %1199 }
0x1aa0   :  { %v1202_v0 = vmul.f32 %v1200_v62, %v1197_v61 }
0x1aa2   :  { %v2063_v1 = vadd.f32 %v1203_v63, %v1202_v0 }
0x1aa4   :  { %1226 = vrot.lane.b32.xlu2 %v2063_v1, %s1660_s3 }
0x1aa7   :  { %v663_v29 = vpop.permute.xlu1 %662 }
0x1aa8   :  { %v665_v17 = vmul.f32 %v663_v29, %v657_v30 }
0x1afe   :  { %v1227_v2 = vpop.permute.xlu2 %1226 }
0x1aff   :  { %1487 = vmatmul.msk.f32.vlgmr.msra.gmra.mxu3 %vm118_vm6, %v1227_v2 }
0x1b82   :  { %v1247_v19 = vpop.f32.mrf.mxu3 }
0x1b83   :  { %v1270_v23 = vadd.f32 %v1247_v19, %v1944_v25  ;;  %v1250_v15 = vadd.f32 %v1247_v19, %v1223_v32 }
0x1b85   :  { %1272 = vrot.lane.b32.xlu0 %v1270_v23, %s1658_s21  ;;  %v1488_v11 = vmul.f32 -1.442695, %v1250_v15 }
0x1b87   :  { %1588 = vpow2.f32 %v1488_v11 }
0x1b8d   :  { %667 = vrot.lane.b32.xlu0 %v665_v17, %s1658_s21  ;;  %v1589_v33 = vpop.eup %1588 }
0x1b8e   :  { %v1254_v34 = vadd.f32 1.0, %v1589_v33 }
0x1b90   :  { %1590 = vrcp.f32 %v1254_v34  ;;  %v1266_v46 = vand.u32 2147483648, %v1254_v34  ;;  %vm1260_vm8 = vweird.f32 %v1254_v34  ;;  %v1264_v40 = vand.u32 2147483647, %v1254_v34 }
0x1b92   :  { %v1267_v41 = vor.u32 1.1754944e-38, %v1266_v46  ;;  %vm1265_vm10 = vcmp.eq.f32.partialorder %v1264_v40, 8.507059e+37 }
0x1b96   :  { %v1591_v35 = vpop.eup %1590 }
0x1b97   :  { %v1256_v36 = vmul.f32 %v1591_v35, %v1254_v34  ;;  %vm1261_vm7 = vweird.f32 %v1591_v35 }
0x1b98   :  { %vm1262_vm9 = vmor %vm1260_vm8, %vm1261_vm7 }
0x1b99   :  { %v1257_v37 = vsub.f32 1.0, %v1256_v36 }
0x1b9b   :  { %v1258_v39 = vmul.f32 %v1591_v35, %v1257_v37 }
0x1b9d   :  { %v1259_v45 = vadd.f32 %v1591_v35, %v1258_v39 }
0x1b9f   :  { %v1263_v47 = vsel %vm1262_vm9, %v1591_v35, %v1259_v45  ;;  %v1505_v45 = vld [vmem:[%s2143_s10] ss:$0 sm:$0xff] }
0x1ba0   :  { %v1268_v42 = vsel %vm1265_vm10, %v1267_v41, %v1263_v47 }
0x1ba1   :  { %v1288_v63 = vmul.f32 %v1268_v42, %v2063_v1 }
0x1bf7   :  { %v1273_v48 = vpop.permute.xlu0 %1272 }
0x1bf8   :  { %v1275_v43 = vmul.f32 %v1273_v48, %v1268_v42  ;;  %v1387_v48 = vrot.slane %v2063_v1, 6 }
0x1bfa   :  { %1277 = vrot.lane.b32.xlu2 %v1275_v43, %s1658_s21 }
0x1bff   :  { %v668_v44 = vpop.permute.xlu0 %667 }
0x1c00   :  { %v670_v49 = vadd.f32 %v668_v44, %v1890_v20  ;;  %v1282_v20 = vsub.f32 1.0, %v1268_v42 }
0x1c02   :  { %1592 = vtanh.f32 %v670_v49 }
0x1c08   :  { %v1593_v50 = vpop.eup %1592 }
0x1c09   :  { %674 = vrot.lane.b32.xlu2 %v1593_v50, %s1660_s3 }
0x1c54   :  { %v1278_v51 = vpop.permute.xlu2 %1277 }
0x1c55   :  { %v1280_v52 = vadd.f32 %v1278_v51, %v1223_v32  ;;  %v1399_v51 = vsel %vm1394_vm11, %v2049_v16, %v1387_v48 }
0x1c57   :  { %1594 = vtanh.f32 %v1280_v52 }
0x1c5d   :  { %v1595_v53 = vpop.eup %1594 }
0x1c5e   :  { %1284 = vrot.lane.b32.xlu1 %v1595_v53, %s1660_s3 }
0x1c63   :  { %v675_v7 = vpop.permute.xlu2 %674 }
0x1c64   :  { %v677_v58 = vmul.f32 %v675_v7, %v672_v55 }
0x1c66   :  { %v681_v60 = vadd.f32 %v680_v56, %v677_v58 }
0x1c68   :  { %v1291_v61 = vrot.slane %v681_v60, 6 }
0x1c6a   :  { %1292 = vrot.lane.b32.xlu1 %v1291_v61, %s1660_s3 }
0x1cd0   :  { %v1285_v62 = vpop.permute.xlu1 %1284 }
0x1cd1   :  { %v1287_v0 = vmul.f32 %v1285_v62, %v1282_v20 }
0x1cd3   :  { %v2081_v2 = vadd.f32 %v1288_v63, %v1287_v0 }
0x1cd5   :  { %1317 = vrot.lane.b32.xlu0 %v2081_v2, %s1660_s3  ;;  %v1389_v44 = vrot.slane %v2081_v2, 4 }
0x1cd7   :  { %v1400_v52 = vsel %vm89_vm0, %v1399_v51, %v1389_v44 }
0x1cdc   :  { %v1293_v3 = vpop.permute.xlu1 %1292 }
0x1cdd   :  { %1489 = vmatmul.msk.f32.vlgmr.msrb.gmra.mxu0 %vm118_vm6, %v1293_v3 }
0x1d47   :  { %v1318_v27 = vpop.permute.xlu0 %1317 }
0x1d48   :  { %1490 = vmatmul.msk.f32.vlgmr.msra.gmra.mxu1 %vm118_vm6, %v1318_v27 }
0x1dc5   :  { %v1338_v8 = vpop.f32.mrf.mxu1 }
0x1dc6   :  { %v1361_v4 = vadd.f32 %v1338_v8, %v1944_v25  ;;  %v1313_v25 = vpop.f32.mrf.mxu0 }
0x1dc7   :  { %v1314_v19 = vadd.f32 %v1969_v5, %v1313_v25  ;;  %v1402_v5 = vld [vmem:[%s2142_s9] sm:$0xff] }
0x1dc8   :  { %1363 = vrot.lane.b32.xlu2 %v1361_v4, %s1658_s21  ;;  %1435 = vmatpush.msrb.mxu2 %v1402_v5 }
0x1dc9   :  { %v1341_v21 = vadd.f32 %v1338_v8, %v1314_v19 }
0x1dcb   :  { %v1491_v57 = vmul.f32 -1.442695, %v1341_v21 }
0x1dcd   :  { %1596 = vpow2.f32 %v1491_v57 }
0x1dd0   :  { %1412 = vrot.lane.b32.xlu2 %v1398_v18, %s1660_s3 }
0x1dd3   :  { %v1597_v13 = vpop.eup %1596 }
0x1dd4   :  { %v1345_v23 = vadd.f32 1.0, %v1597_v13 }
0x1dd6   :  { %1598 = vrcp.f32 %v1345_v23  ;;  %v1357_v17 = vand.u32 2147483648, %v1345_v23  ;;  %vm1351_vm14 = vweird.f32 %v1345_v23  ;;  %v1355_v12 = vand.u32 2147483647, %v1345_v23 }
0x1dd8   :  { %v1358_v15 = vor.u32 1.1754944e-38, %v1357_v17  ;;  %vm1356_vm2 = vcmp.eq.f32.partialorder %v1355_v12, 8.507059e+37 }
0x1ddc   :  { %v1599_v26 = vpop.eup %1598 }
0x1ddd   :  { %v1347_v31 = vmul.f32 %v1599_v26, %v1345_v23  ;;  %vm1352_vm13 = vweird.f32 %v1599_v26 }
0x1dde   :  { %vm1353_vm15 = vmor %vm1351_vm14, %vm1352_vm13 }
0x1ddf   :  { %v1348_v28 = vsub.f32 1.0, %v1347_v31 }
0x1de1   :  { %v1349_v29 = vmul.f32 %v1599_v26, %v1348_v28 }
0x1de3   :  { %v1350_v30 = vadd.f32 %v1599_v26, %v1349_v29 }
0x1de5   :  { %v1354_v32 = vsel %vm1353_vm15, %v1599_v26, %v1350_v30 }
0x1de6   :  { %v1359_v33 = vsel %vm1356_vm2, %v1358_v15, %v1354_v32 }
0x1de7   :  { %v1373_v47 = vsub.f32 1.0, %v1359_v33  ;;  %v1379_v42 = vmul.f32 %v1359_v33, %v2081_v2 }
0x1e22   :  { %v1364_v11 = vpop.permute.xlu2 %1363 }
0x1e23   :  { %v1366_v34 = vmul.f32 %v1364_v11, %v1359_v33 }
0x1e25   :  { %1368 = vrot.lane.b32.xlu0 %v1366_v34, %s1658_s21 }
0x1e2a   :  { %v1413_v35 = vpop.permute.xlu2 %1412 }
0x1e2b   :  { %1492 = vmatmul.msk.f32.vlgmr.msrb.gmra.mxu2 %vm118_vm6, %v1413_v35 }
0x1e97   :  { %v1369_v36 = vpop.permute.xlu0 %1368 }
0x1e98   :  { %v1371_v37 = vadd.f32 %v1369_v36, %v1314_v19 }
0x1e9a   :  { %1600 = vtanh.f32 %v1371_v37 }
0x1ea0   :  { %v1601_v39 = vpop.eup %1600 }
0x1ea1   :  { %1375 = vrot.lane.b32.xlu1 %v1601_v39, %s1660_s3 }
0x1eae   :  { %v1437_v46 = vpop.f32.mrf.mxu2 }
0x1eaf   :  { %v1438_v40 = vadd.f32 %v1505_v45, %v1437_v46 }
0x1eb1   :  { %1443 = vst.msk [vmem:[%s2144_s11] sm:$0xff] %vm82_vm1, %v1438_v40 }
0x1f13   :  { %v1376_v41 = vpop.permute.xlu1 %1375 }
0x1f14   :  { %v1378_v43 = vmul.f32 %v1376_v41, %v1373_v47 }
0x1f16   :  { %v1380_v49 = vadd.f32 %v1379_v42, %v1378_v43 }
0x1f18   :  { %v1392_v50 = vrot.slane %v1380_v49, 2 }
0x1f1a   :  { %v1401_v53 = vsel %vm1397_vm12, %v1400_v52, %v1392_v50 }
0x1f1b   :  { %1414 = vrot.lane.b32.xlu0 %v1401_v53, %s1660_s3 }
0x1f8d   :  { %v1415_v54 = vpop.permute.xlu0 %1414 }
0x1f8e   :  { %1493 = vmatmul.msk.f32.gmra.mxu2 %vm118_vm6, %v1415_v54 }
0x2011   :  { %v1440_v1 = vpop.f32.mrf.mxu2 }
0x2012   :  { %v1441_v55 = vadd.f32 %v1505_v45, %v1440_v1 }
0x2014   :  { %1444 = vst.msk [vmem:[%s2144_s11 + $0x8] sm:$0xff] %vm82_vm1, %v1441_v55 }
0x2015   :  { %1449 = vsyncpa [#allocation3], 1 }
0x2016   :  { %1450 = vsyncpa [#allocation5], 1 }

</bundles_post_ra>
